<compile_context>
chip_gen: v7x
topology: tpu7x:2x2x1
jax: 0.10.0
libtpu: 0.0.40
codegen_flags: <defaults>
</compile_context>

<pallas_src>
import numpy as np

import jax
import jax.numpy as jnp
from jax.experimental import pallas as pl
from jax.experimental.pallas import tpu as pltpu

# Sizes / constants hard-coded by the FX graph.
IN_H, IN_W = 345, 456
OUT_H, OUT_W = 270, 270
C = 3
SCALE_W = 1.6888888888888889        # 456 / 270
INV_SCALE_W = 0.5921052631578947    # 270 / 456
SCALE_H = 1.2777777777777777        # 345 / 270
INV_SCALE_H = 0.782608695652174     # 270 / 345
MAX_TAPS = 5


def _aa_bilinear_weights_np(in_size, out_size, scale, inv_scale):
    """Replicates the weight math of the FX graph (float32 math, trunc-to-int)."""
    scale_f = np.float32(scale)
    inv_scale_f = np.float32(inv_scale)
    x = np.arange(out_size, dtype=np.float32)
    center = (x + np.float32(0.5)) * scale_f
    lo = np.maximum((center - scale_f + np.float32(0.5)).astype(np.int64), 0)        # clamp_min
    hi = np.minimum((center + scale_f + np.float32(0.5)).astype(np.int64), in_size)  # clamp_max
    size = np.minimum(hi - lo, MAX_TAPS)
    k = np.arange(MAX_TAPS, dtype=np.int64)[:, None]                                 # (5, 1)
    dist = (k.astype(np.float32) + lo.astype(np.float32) - center
            + np.float32(0.5)) * inv_scale_f
    w = np.float32(1.0) - np.minimum(np.abs(dist), np.float32(1.0))
    w = np.where(k < size, w, np.float32(0.0)).astype(np.float32)
    w = w / np.sum(w, axis=0)                                                        # normalize over all 5 taps
    idx = np.minimum(lo[None, :] + k, in_size - 1)                                   # (5, out), clamped gather index
    return w.astype(np.float32), idx


def _build_resample_matrix_np(in_size, out_size, scale, inv_scale, taps_used):
    """Dense (in_size, out_size) matrix equivalent to the tap gather + weighted sum.

    taps_used < MAX_TAPS reproduces the graph's zeroing of the 5th horizontal tap
    AFTER normalization (it is multiplied by zeros([270]) in the FX graph).
    """
    w, idx = _aa_bilinear_weights_np(in_size, out_size, scale, inv_scale)
    mat = np.zeros((in_size, out_size), dtype=np.float32)
    cols = np.arange(out_size)
    for kk in range(taps_used):
        np.add.at(mat, (idx[kk], cols), w[kk])   # accumulate duplicates at clamped edges
    return mat


# Host-side constants, baked as literals at trace time (cast to bf16 in the wrapper).
_WH = _build_resample_matrix_np(IN_W, OUT_W, SCALE_W, INV_SCALE_W, taps_used=4)        # (456, 270)
_WVT = _build_resample_matrix_np(IN_H, OUT_H, SCALE_H, INV_SCALE_H, taps_used=5).T     # (270, 345)


def _resize_plane_kernel(x_ref, wh_ref, wvt_ref, o_ref):
    # x_ref:   (1, IN_H, IN_W)    one (batch, channel) plane, float32
    # wh_ref:  (IN_W, OUT_W)      horizontal resampling matrix, bf16, VMEM-resident
    # wvt_ref: (OUT_H, IN_H)      transposed vertical resampling matrix, bf16
    # o_ref:   (1, OUT_H, OUT_W)  uint8 output (round + clamp + cast fused in-kernel)
    x = x_ref[0].astype(jnp.bfloat16)                                       # in-kernel cast (VPU)
    tmp = jnp.dot(x, wh_ref[...], preferred_element_type=jnp.float32)       # (IN_H, OUT_W) f32 acc
    out = jnp.dot(wvt_ref[...], tmp.astype(jnp.bfloat16),
                  preferred_element_type=jnp.float32)                       # (OUT_H, OUT_W)
    rounded = jnp.clip(jnp.round(out), 0.0, 255.0)                          # aten.round is half-to-even
    # f32 -> i32 -> u8: the proven-safe Mosaic cast chain (round already made
    # these exact integers, so trunc-toward-zero is exact).
    o_ref[0] = rounded.astype(jnp.int32).astype(jnp.uint8)


@jax.jit
def upsample_bilinear_aa(x):
    """x: (N, 3, 345, 456) float32 -> (N, 3, 270, 270) uint8."""
    N, c, H, W = x.shape
    assert (c, H, W) == (C, IN_H, IN_W)

    wh = jnp.asarray(_WH, dtype=jnp.bfloat16)     # trace-time constants
    wvt = jnp.asarray(_WVT, dtype=jnp.bfloat16)
    n_planes = N * C
    xf = x.reshape(n_planes, IN_H, IN_W)          # free (contiguous) reshape

    cost = pl.CostEstimate(
        flops=2 * n_planes * (IN_H * IN_W * OUT_W + OUT_H * IN_H * OUT_W),
        transcendentals=0,
        bytes_accessed=(n_planes * (IN_H * IN_W * 4 + OUT_H * OUT_W)
                        + (IN_W * OUT_W + OUT_H * IN_H) * 2),
    )

    out_u8 = pl.pallas_call(
        _resize_plane_kernel,
        out_shape=jax.ShapeDtypeStruct((n_planes, OUT_H, OUT_W), jnp.uint8),
        grid_spec=pltpu.PrefetchScalarGridSpec(
            num_scalar_prefetch=0,
            grid=(n_planes,),                                   # one plane per grid step
            in_specs=[
                pl.BlockSpec((1, IN_H, IN_W), lambda p: (p, 0, 0)),
                pl.BlockSpec((IN_W, OUT_W), lambda p: (0, 0)),  # constant -> fetched once
                pl.BlockSpec((OUT_H, IN_H), lambda p: (0, 0)),  # constant -> fetched once
            ],
            out_specs=pl.BlockSpec((1, OUT_H, OUT_W), lambda p: (p, 0, 0)),
        ),
        compiler_params=pltpu.CompilerParams(
            dimension_semantics=("parallel",),   # independent planes -> v7x 2-TC sharding
        ),
        cost_estimate=cost,
    )(xf, wh, wvt)

    return out_u8.reshape(N, C, OUT_H, OUT_W)


if __name__ == "__main__":
    key = jax.random.PRNGKey(0)
    N = 1  # matches "bs_1" in the repro name; arg0_1 is this batch size
    x = jax.random.uniform(
        key, (N, C, IN_H, IN_W), dtype=jnp.float32, minval=0.0, maxval=255.0
    )
    out = upsample_bilinear_aa(x)
    jax.block_until_ready(out)
    assert out.shape == (N, C, OUT_H, OUT_W)
    assert out.dtype == jnp.uint8
    print("KERNEL_OK")
</pallas_src>

<mosaic_0001>
module attributes {stable_mosaic.version = 11 : i64} {
  func.func @_resize_plane_kernel(%arg0: i32, %arg1: memref<1x345x456xf32, #tpu.memory_space<vmem>>, %arg2: memref<456x270xbf16, #tpu.memory_space<vmem>>, %arg3: memref<270x345xbf16, #tpu.memory_space<vmem>>, %arg4: memref<1x270x270xi8, #tpu.memory_space<vmem>>) attributes {dimension_semantics = [#tpu.dimension_semantics<parallel>], iteration_bounds = array<i64: 3>, scalar_prefetch = 0 : i64, scratch_operands = 0 : i64, tpu.core_type = #tpu.core_type<tc>, window_params = [{transform_indices = @transform_0, window_bounds = array<i64: 1, 345, 456>}, {pipeline_mode = #tpu.pipeline_mode<synchronous>, transform_indices = @transform_1, window_bounds = array<i64: 456, 270>}, {pipeline_mode = #tpu.pipeline_mode<synchronous>, transform_indices = @transform_2, window_bounds = array<i64: 270, 345>}, {transform_indices = @transform_3, window_bounds = array<i64: 1, 270, 270>}]} {
    %c0 = arith.constant 0 : index
    %c0_0 = arith.constant 0 : index
    %c0_1 = arith.constant 0 : index
    %0 = vector.load %arg1[%c0, %c0_0, %c0_1] : memref<1x345x456xf32, #tpu.memory_space<vmem>>, vector<1x345x456xf32>
    %1 = vector.shape_cast %0 : vector<1x345x456xf32> to vector<345x456xf32>
    %2 = arith.truncf %1 : vector<345x456xf32> to vector<345x456xbf16>
    %c0_2 = arith.constant 0 : index
    %c0_3 = arith.constant 0 : index
    %3 = vector.load %arg2[%c0_2, %c0_3] : memref<456x270xbf16, #tpu.memory_space<vmem>>, vector<456x270xbf16>
    %cst = arith.constant dense<0.000000e+00> : vector<345x270xf32>
    %4 = tpu.matmul %2, %3, %cst {dimension_numbers = #tpu.dot_dimension_numbers<[1], [0], [0], [1], [0, 0, 1, 1], [], []>} : vector<345x456xbf16>, vector<456x270xbf16>, vector<345x270xf32> -> vector<345x270xf32>
    %c0_4 = arith.constant 0 : index
    %c0_5 = arith.constant 0 : index
    %5 = vector.load %arg3[%c0_4, %c0_5] : memref<270x345xbf16, #tpu.memory_space<vmem>>, vector<270x345xbf16>
    %6 = arith.truncf %4 : vector<345x270xf32> to vector<345x270xbf16>
    %cst_6 = arith.constant dense<0.000000e+00> : vector<270x270xf32>
    %7 = tpu.matmul %5, %6, %cst_6 {dimension_numbers = #tpu.dot_dimension_numbers<[1], [0], [0], [1], [0, 0, 1, 1], [], []>} : vector<270x345xbf16>, vector<345x270xbf16>, vector<270x270xf32> -> vector<270x270xf32>
    %8 = math.roundeven %7 : vector<270x270xf32>
    %cst_7 = arith.constant 0.000000e+00 : f32
    %cst_8 = arith.constant 2.550000e+02 : f32
    %9 = vector.broadcast %cst_7 : f32 to vector<270x270xf32>
    %10 = arith.maximumf %9, %8 : vector<270x270xf32>
    %11 = vector.broadcast %cst_8 : f32 to vector<270x270xf32>
    %12 = arith.minimumf %11, %10 : vector<270x270xf32>
    %13 = arith.fptosi %12 : vector<270x270xf32> to vector<270x270xi32>
    %14 = arith.trunci %13 : vector<270x270xi32> to vector<270x270xi8>
    %c0_9 = arith.constant 0 : index
    %c0_10 = arith.constant 0 : index
    %c0_11 = arith.constant 0 : index
    %15 = vector.load %arg4[%c0_9, %c0_10, %c0_11] : memref<1x270x270xi8, #tpu.memory_space<vmem>>, vector<1x270x270xi8>
    %16 = vector.shape_cast %15 : vector<1x270x270xi8> to vector<270x270xi8>
    %17 = vector.shape_cast %14 : vector<270x270xi8> to vector<1x270x270xi8>
    tpu.vector_store %arg4[%c0_9, %c0_10, %c0_11], %17 {strides = array<i32>} : memref<1x270x270xi8, #tpu.memory_space<vmem>>, vector<1x270x270xi8>,
    return
  }
  func.func @transform_0(%arg0: i32) -> (i32, i32, i32) {
    %c0_i32 = arith.constant 0 : i32
    %c0_i32_0 = arith.constant 0 : i32
    %c0_i32_1 = arith.constant 0 : i32
    return %arg0, %c0_i32, %c0_i32_0 : i32, i32, i32
  }
  func.func @transform_1(%arg0: i32) -> (i32, i32) {
    %c0_i32 = arith.constant 0 : i32
    %c0_i32_0 = arith.constant 0 : i32
    %c0_i32_1 = arith.constant 0 : i32
    return %c0_i32, %c0_i32_0 : i32, i32
  }
  func.func @transform_2(%arg0: i32) -> (i32, i32) {
    %c0_i32 = arith.constant 0 : i32
    %c0_i32_0 = arith.constant 0 : i32
    %c0_i32_1 = arith.constant 0 : i32
    return %c0_i32, %c0_i32_0 : i32, i32
  }
  func.func @transform_3(%arg0: i32) -> (i32, i32, i32) {
    %c0_i32 = arith.constant 0 : i32
    %c0_i32_0 = arith.constant 0 : i32
    %c0_i32_1 = arith.constant 0 : i32
    return %arg0, %c0_i32, %c0_i32_0 : i32, i32, i32
  }
}

</mosaic_0001>

<bundles_post_ra>
// kernel: upsample_bilinear_aa.1
= control target key start
LH: loop header
LB: loop body
LE: loop exit
PB: predicated region body
PF: predicated region fallthrough
CT: control target
= control target key end

     0   :  { %8 = vsyncpa [#allocation3], 0  ;;  %s6424_s0 = inlined_call_operand.vmem [shape: f32[3,345,456], index: 0, kind: input, shape index: {}]   ;;  %s6425_s1 = inlined_call_operand.vmem [shape: bf16[456,270], index: 1, kind: input, shape index: {}]   ;;  %s6426_s2 = inlined_call_operand.vmem [shape: bf16[270,345], index: 2, kind: input, shape index: {}]   ;;  %s6427_s3 = inlined_call_operand.hbm [shape: u8[3,270,270], index: 3, kind: output, shape index: {}]  }
   0x1   :  { %10 = vsyncpa [#allocation3 + $0x1], 0  ;;  %s5414_s12 = smov 0   ;;  %s5416_s13 = smov 0  }
   0x2   :  { %s5418_s14 = smov 0   ;;  %s5420_s15 = smov 0  }
   0x3 LB: > { %s5435_s16 = sadd.s32 4294967295, %s5385_s15   ;;  %s3840_s17 = sadd.s32 4294967294, %s5385_s15   ;;  %s5385_s15 = sphi %s5420_s15, %s6439_s15   ;;  %s5381_s14 = sphi %s5418_s14, %s6438_s14   ;;  %s5377_s13 = sphi %s5416_s13, %s6437_s13   ;;  %s5373_s12 = sphi %s5414_s12, %s6436_s12  }
   0x4   : > { %s5439_s18 = sadd.s32 1, %s5385_s15   ;;  %s91_s19 = sadd.s32 1, %s5381_s14 }
   0x5   : > { %s88_s20 = ssub.s32 %s5385_s15, %s5439_s18  ;;  %p101_p0 = scmp.ne.s32.totalorder %s5381_s14, %s5377_s13 }
   0x6   : > { %p89_p1 = scmp.eq.s32.totalorder %s88_s20, 0  ;;  %p102_p2 = scmp.eq.s32.totalorder %s5435_s16, 2 }
   0x7   : > { %p107_p3 = scmp.ne.s32.totalorder %s5377_s13, %s5373_s12  ;;  %p108_p4 = scmp.eq.s32.totalorder %s3840_s17, 2 }
   0x8   : > { %s5450_s21 = scalar_select %p89_p1, %s5381_s14, %s91_s19  }
   0x9   : > { %p5452_p5 = por %p102_p2, %p101_p0  ;;  %p5456_p6 = por %p108_p4, %p107_p3 }
   0xa   : > { %p3843_p7 = scmp.ge.s32.totalorder %s5385_s15, 1  ;;  %p140_p8 = scmp.lt.s32.totalorder %s5385_s15, 4 }
   0xc   : > { %p141_p9 = pnand %p3843_p7, %p140_p8 }
   0xd   : > { %v5140_v0 = vld [vmem:[%s6425_s1 + $0x4] ss:$12 sps:$4 sm:$0xff] (!%p141_p9)   ;;  %v5387_v1 = vmov (!%p141_p9), 0   ;;  %v5142_v2 = vld [vmem:[%s6425_s1 + $0x8] ss:$12 sps:$4 sm:$0xff] (!%p141_p9)   ;;  %p164_p10 = scmp.lt.s32.totalorder (!%p141_p9), %s5435_s16, 2 }
   0xe   : > { %144 = sbr.rel (%p141_p9) target bundleno = 1100 (0x44c), region = 32  ;;  %1587 = vmatprep.subr.bf16.mxu1 (!%p141_p9), %v5387_v1  ;;  %1081 = vmatprep.subr.bf16.mxu0 (!%p141_p9), %v5140_v0  ;;  %v5143_v3 = vld [vmem:[%s6425_s1] ss:$12 sps:$4 sm:$0xff] (!%p141_p9)   ;;  %v5144_v4 = vld [vmem:[%s6425_s1 + $0x1c] ss:$12 sps:$4 sm:$0xff] (!%p141_p9)   ;;  %vm1071_vm0 = vcmask (!%p141_p9), 1043456  }
   0xf   : > { %1588 = vmatpush1.bf16.msra.mxu1 (!%p141_p9), %v5142_v2  ;;  %1082 = vmatpush1.bf16.msra.mxu0 (!%p141_p9), %v5143_v3  ;;  %v5146_v5 = vld [vmem:[%s6425_s1 + $0x20] ss:$12 sps:$4 sm:$0xff] (!%p141_p9)   ;;  %v5147_v6 = vld [vmem:[%s6425_s1 + $0x18] ss:$12 sps:$4 sm:$0xff] (!%p141_p9)   ;;  %v5151_v9 = vld [vmem:[%s6425_s1 + $0x30] ss:$12 sps:$4 sm:$0xff] (!%p141_p9)  }
  0x10   : > { %1589 = vmatprep.subr.bf16.mxu1 (!%p141_p9), %v5387_v1  ;;  %1083 = vmatprep.subr.bf16.mxu0 (!%p141_p9), %v5144_v4  ;;  %v5148_v7 = vld [vmem:[%s6425_s1 + $0x34] ss:$12 sps:$4 sm:$0xff] (!%p141_p9)   ;;  %v5150_v8 = vld [vmem:[%s6425_s1 + $0x38] ss:$12 sps:$4 sm:$0xff] (!%p141_p9)   ;;  %v5154_v11 = vld [vmem:[%s6425_s1 + $0x50] ss:$12 sps:$4 sm:$0xff] (!%p141_p9)  }
  0x11   : > { %v5152_v10 = vld [vmem:[%s6425_s1 + $0x4c] ss:$12 sps:$4 sm:$0xff] (!%p141_p9)   ;;  %v5155_v12 = vld [vmem:[%s6425_s1 + $0x48] ss:$12 sps:$4 sm:$0xff] (!%p141_p9)   ;;  %v5156_v13 = vld [vmem:[%s6425_s1 + $0x64] ss:$12 sps:$4 sm:$0xff] (!%p141_p9)  }
  0x12   : > { %v5158_v14 = vld [vmem:[%s6425_s1 + $0x68] ss:$12 sps:$4 sm:$0xff] (!%p141_p9)   ;;  %v5159_v15 = vld [vmem:[%s6425_s1 + $0x60] ss:$12 sps:$4 sm:$0xff] (!%p141_p9)   ;;  %v5163_v18 = vld [vmem:[%s6425_s1 + $0x78] ss:$12 sps:$4 sm:$0xff] (!%p141_p9)  }
  0x13   : > { %1590 = vmatpush1.bf16.msra.mxu1 (!%p141_p9), %v5146_v5  ;;  %1084 = vmatpush1.bf16.msra.mxu0 (!%p141_p9), %v5147_v6  ;;  %v5160_v16 = vld [vmem:[%s6425_s1 + $0x7c] ss:$12 sps:$4 sm:$0xff] (!%p141_p9)   ;;  %v5162_v17 = vld [vmem:[%s6425_s1 + $0x80] ss:$12 sps:$4 sm:$0xff] (!%p141_p9)   ;;  %v5166_v20 = vld [vmem:[%s6425_s1 + $0x98] ss:$12 sps:$4 sm:$0xff] (!%p141_p9)  }
  0x14   : > { %1591 = vmatprep.subr.bf16.mxu1 (!%p141_p9), %v5387_v1  ;;  %1085 = vmatprep.subr.bf16.mxu0 (!%p141_p9), %v5148_v7  ;;  %v5164_v19 = vld [vmem:[%s6425_s1 + $0x94] ss:$12 sps:$4 sm:$0xff] (!%p141_p9)   ;;  %v5167_v21 = vld [vmem:[%s6425_s1 + $0x90] ss:$12 sps:$4 sm:$0xff] (!%p141_p9)   ;;  %v5168_v22 = vld [vmem:[%s6425_s1 + $0xac] ss:$12 sps:$4 sm:$0xff] (!%p141_p9)  }
  0x15   : > { %s165_s5 = scalar_select %p164_p10, %s5435_s16, 2  ;;  %v5170_v23 = vld [vmem:[%s6425_s1 + $0xb0] ss:$12 sps:$4 sm:$0xff]   ;;  %v5171_v24 = vld [vmem:[%s6425_s1 + $0xa8] ss:$12 sps:$4 sm:$0xff]   ;;  %vm1004_vm1 = vcmask 588800  }
  0x16   : > { %v5172_v25 = vld [vmem:[%s6425_s1 + $0xc4] ss:$12 sps:$4 sm:$0xff]   ;;  %v5174_v26 = vld [vmem:[%s6425_s1 + $0xc8] ss:$12 sps:$4 sm:$0xff]   ;;  %v5175_v27 = vld [vmem:[%s6425_s1 + $0xc0] ss:$12 sps:$4 sm:$0xff]  }
  0x17   : > { %1592 = vmatpush1.bf16.msra.mxu1 %v5150_v8  ;;  %1086 = vmatpush1.bf16.msra.mxu0 %v5151_v9  ;;  %s4787_s17 = smul.u32 1408, %s165_s5  ;;  %v5176_v28 = vld [vmem:[%s6425_s1 + $0xdc] ss:$12 sps:$4 sm:$0xff]   ;;  %v5178_v29 = vld [vmem:[%s6425_s1 + $0xe0] ss:$12 sps:$4 sm:$0xff]   ;;  %vm2446_vm2 = vcmask 1044480  }
  0x18   : > { %1593 = vmatprep.subr.bf16.mxu1 %v5387_v1  ;;  %1087 = vmatprep.subr.bf16.mxu0 %v5152_v10  ;;  %v5179_v30 = vld [vmem:[%s6425_s1 + $0xd8] ss:$12 sps:$4 sm:$0xff]   ;;  %v5180_v31 = vld [vmem:[%s6425_s1 + $0xf4] ss:$12 sps:$4 sm:$0xff]   ;;  %v5183_v36 = vld [vmem:[%s6425_s1 + $0xf0] ss:$12 sps:$4 sm:$0xff]  }
  0x19   : > { %s5560_s30 = scalar_lea.vmem %s6424_s0, %s4787_s17  ;;  %v5182_v35 = vld [vmem:[%s6425_s1 + $0xf8] ss:$12 sps:$4 sm:$0xff]   ;;  %v5186_v38 = vld [vmem:[%s6425_s1 + $0x110] ss:$12 sps:$4 sm:$0xff]   ;;  %v5187_v39 = vld [vmem:[%s6425_s1 + $0x108] ss:$12 sps:$4 sm:$0xff]  }
  0x1a   : > { %v171_v32 = vld [vmem:[%s5560_s30 + $0x8] sm:$0xff]  ;;  %v5188_v40 = vld [vmem:[%s6425_s1 + $0x124] ss:$12 sps:$4 sm:$0xff]   ;;  %v5196_v46 = vld [vmem:[%s6425_s1 + $0x154] ss:$12 sps:$4 sm:$0xff]   ;;  %vm5390_vm3 = vmmov 0  }
  0x1b   : > { %1594 = vmatpush1.bf16.msra.mxu1 %v5154_v11  ;;  %1088 = vmatpush1.bf16.msra.mxu0 %v5155_v12  ;;  %v175_v33 = vld [vmem:[%s5560_s30 + $0x28] sm:$0xff]  ;;  %v5195_v45 = vld [vmem:[%s6425_s1 + $0x138] ss:$12 sps:$4 sm:$0xff]   ;;  %v5199_v48 = vld [vmem:[%s6425_s1 + $0x150] ss:$12 sps:$4 sm:$0xff]   ;;  %vm2394_vm4 = vcmask 728064  }
  0x1c   : > { %1595 = vmatprep.subr.bf16.mxu1 %v5387_v1  ;;  %1089 = vmatprep.subr.bf16.mxu0 %v5156_v13  ;;  %v347_v34 = vpack.c.bf16 %v175_v33, %v171_v32  ;;  %v5184_v37 = vld [vmem:[%s6425_s1 + $0x10c] ss:$12 sps:$4 sm:$0xff]   ;;  %v5190_v41 = vld [vmem:[%s6425_s1 + $0x128] ss:$12 sps:$4 sm:$0xff]   ;;  %v5202_v50 = vld [vmem:[%s6425_s1 + $0x170] ss:$12 sps:$4 sm:$0xff]  }
  0x1d   : > { %v5191_v42 = vld [vmem:[%s6425_s1 + $0x120] ss:$12 sps:$4 sm:$0xff]   ;;  %v5192_v43 = vld [vmem:[%s6425_s1 + $0x13c] ss:$12 sps:$4 sm:$0xff]   ;;  %v5198_v47 = vld [vmem:[%s6425_s1 + $0x158] ss:$12 sps:$4 sm:$0xff]  }
  0x1e   : > { %1619 = vmatprep.mubr.bf16.mxu1 %v347_v34  ;;  %1113 = vmatprep.mubr.bf16.mxu0 %v347_v34  ;;  %v5194_v44 = vld [vmem:[%s6425_s1 + $0x140] ss:$12 sps:$4 sm:$0xff]   ;;  %v5203_v51 = vld [vmem:[%s6425_s1 + $0x168] ss:$12 sps:$4 sm:$0xff]   ;;  %v5206_v56 = vld [vmem:[%s6425_s1 + $0x184] ss:$12 sps:$4 sm:$0xff]  }
  0x1f   : > { %1596 = vmatpush1.bf16.msra.mxu1 %v5158_v14  ;;  %1090 = vmatpush1.bf16.msra.mxu0 %v5159_v15  ;;  %v5200_v49 = vld [vmem:[%s6425_s1 + $0x16c] ss:$12 sps:$4 sm:$0xff]   ;;  %v170_v52 = vld [vmem:[%s5560_s30] sm:$0xff]  ;;  %v5207_v60 = vld [vmem:[%s6425_s1 + $0x188] ss:$12 sps:$4 sm:$0xff]   ;;  %s161_s17 = sand.u32 1, %s5377_s13  }
  0x20   : > { %1597 = vmatprep.subr.bf16.mxu1 %v5387_v1  ;;  %1091 = vmatprep.subr.bf16.mxu0 %v5160_v16  ;;  %v174_v53 = vld [vmem:[%s5560_s30 + $0x20] sm:$0xff]  ;;  %v179_v54 = vld [vmem:[%s5560_s30 + $0x48] sm:$0xff]  ;;  %v5212_v8 = vld [vmem:[%s6425_s1 + $0x1b0] ss:$12 sps:$4 sm:$0xff]   ;;  %vm3712_vm5 = vcmask 1041408   ;;  %vm3713_vm6 = vcmask 1043458  }
  0x21   : > { %v183_v55 = vld [vmem:[%s5560_s30 + $0x68] sm:$0xff]  ;;  %v346_v57 = vpack.c.bf16 %v174_v53, %v170_v52  ;;  %v178_v62 = vld [vmem:[%s5560_s30 + $0x40] sm:$0xff]  ;;  %v5219_v16 = vld [vmem:[%s6425_s1 + $0x1d0] ss:$12 sps:$4 sm:$0xff]   ;;  %s6243_s19 = smul.u32 204, %s161_s17  ;;  %vm3715_vm7 = vcmask 111620  }
  0x22   : > { %v351_v58 = vpack.c.bf16 %v183_v55, %v179_v54  ;;  %v5204_v59 = vld [vmem:[%s6425_s1 + $0x180] ss:$12 sps:$4 sm:$0xff]   ;;  %v5210_v61 = vld [vmem:[%s6425_s1 + $0x19c] ss:$12 sps:$4 sm:$0xff]   ;;  %v5208_v3 = vld [vmem:[%s6425_s1 + $0x198] ss:$12 sps:$4 sm:$0xff]  }
  0x23   : > { %1598 = vmatpush1.bf16.msra.mxu1 %v5162_v17  ;;  %1092 = vmatpush1.bf16.msra.mxu0 %v5163_v18  ;;  %v182_v63 = vld [vmem:[%s5560_s30 + $0x60] sm:$0xff]  ;;  %v187_v0 = vld [vmem:[%s5560_s30 + $0x88] sm:$0xff]  ;;  %v5244_v55 = vld [vmem:[%s6425_s1 + $0x270] ss:$12 sps:$4 sm:$0xff]   ;;  %s6253_s20 = scalar_lea.vmem [#allocation2], %s6243_s19  ;;  %s5094_s24 = smul.u32 3264, %s5435_s16 }
  0x24   : > { %1599 = vmatprep.subr.bf16.mxu1 %v5387_v1  ;;  %1093 = vmatprep.subr.bf16.mxu0 %v5164_v19  ;;  %v191_v2 = vld [vmem:[%s5560_s30 + $0xa8] sm:$0xff]  ;;  %v5214_v5 = vld [vmem:[%s6425_s1 + $0x1b4] ss:$12 sps:$4 sm:$0xff]   ;;  %v350_v6 = vpack.c.bf16 %v182_v63, %v178_v62  ;;  %v5215_v9 = vld [vmem:[%s6425_s1 + $0x1b8] ss:$12 sps:$4 sm:$0xff]   ;;  %s3778_s25 = sshll.u32 %s6253_s20, 4  ;;  %s6375_s25 = int_to_ptr.vmem [resolvable:$true] %s3778_s25 }
  0x25   : > { %v5211_v4 = vld [vmem:[%s6425_s1 + $0x1a0] ss:$12 sps:$4 sm:$0xff]   ;;  %v355_v7 = vpack.c.bf16 %v191_v2, %v187_v0  ;;  %v5216_v15 = vld [vmem:[%s6425_s1 + $0x1c8] ss:$12 sps:$4 sm:$0xff]   ;;  %v5222_v17 = vld [vmem:[%s6425_s1 + $0x1e4] ss:$12 sps:$4 sm:$0xff]   ;;  %s6373_s28 = scalar_lea.hbm %s6427_s3, %s5094_s24 }
  0x26   : > { %v5218_v10 = vld [vmem:[%s6425_s1 + $0x1cc] ss:$12 sps:$4 sm:$0xff]   ;;  %v186_v11 = vld [vmem:[%s5560_s30 + $0x80] sm:$0xff]  ;;  %v5253_v62 = vld [vmem:[%s6425_s1 + $0x2a8] ss:$0 sps:$4 sm:$0xff]   ;;  %s6383_s16 = scalar_lea.sflag [#allocation3], %s161_s17 }
  0x27   : > { %1600 = vmatpush1.bf16.msra.mxu1 %v5166_v20  ;;  %1094 = vmatpush1.bf16.msra.mxu0 %v5167_v21  ;;  %v190_v12 = vld [vmem:[%s5560_s30 + $0xa0] sm:$0xff]  ;;  %v195_v13 = vld [vmem:[%s5560_s30 + $0xc8] sm:$0xff]  ;;  %vm3714_vm8 = vmor %vm3713_vm6, %vm3712_vm5  ;;  %vm3751_vm10 = vsmask.f32 1280  ;;  %vm3754_vm11 = vsmask.f32 3328 }
  0x28   : > { %1601 = vmatprep.subr.bf16.mxu1 %v5387_v1  ;;  %1095 = vmatprep.subr.bf16.mxu0 %v5168_v22  ;;  %v199_v14 = vld [vmem:[%s5560_s30 + $0xe8] sm:$0xff]  ;;  %v354_v18 = vpack.c.bf16 %v190_v12, %v186_v11  ;;  %v5231_v33 = vld [vmem:[%s6425_s1 + $0x218] ss:$12 sps:$4 sm:$0xff]   ;;  %v5246_v53 = vld [vmem:[%s6425_s1 + $0x274] ss:$12 sps:$4 sm:$0xff]   ;;  %s5391_s29 = smov [#allocation2]  }
  0x29   : > { %v5220_v19 = vld [vmem:[%s6425_s1 + $0x1e0] ss:$12 sps:$4 sm:$0xff]   ;;  %v359_v20 = vpack.c.bf16 %v199_v14, %v195_v13  ;;  %v5223_v21 = vld [vmem:[%s6425_s1 + $0x1e8] ss:$12 sps:$4 sm:$0xff]   ;;  %vm6248_vm9 = vmor %vm3715_vm7, %vm3714_vm8  ;;  %vm3758_vm14 = vsmask.f32 5376 }
  0x2a   : > { %v5226_v22 = vld [vmem:[%s6425_s1 + $0x1fc] ss:$12 sps:$4 sm:$0xff]   ;;  %v5234_v34 = vld [vmem:[%s6425_s1 + $0x22c] ss:$12 sps:$4 sm:$0xff]   ;;  %v230_v11 = vld [vmem:[%s5560_s30 + $0x1e0] sm:$0xff]  ;;  %s5327_s4 = sshll.u32 %s5391_s29, 4  ;;  %s5328_s4 = int_to_ptr.vmem [resolvable:$false] %s5327_s4 }
  0x2b   : > { %1602 = vmatpush1.bf16.msra.mxu1 %v5170_v23  ;;  %1096 = vmatpush1.bf16.msra.mxu0 %v5171_v24  ;;  %v194_v23 = vld [vmem:[%s5560_s30 + $0xc0] sm:$0xff]  ;;  %v227_v63 = vld [vmem:[%s5560_s30 + $0x1c8] sm:$0xff]  ;;  %vm6347_vm12 = vmand %vm3712_vm5, %vm3751_vm10  ;;  %s5329_s5 = scalar_lea.vmem %s5328_s4, 6528  ;;  %p5330_p0 = scmp.lt.s32.totalorder %s6375_s25, %s5328_s4 }
  0x2c   : > { %1603 = vmatprep.subr.bf16.mxu1 %v5387_v1  ;;  %1097 = vmatprep.subr.bf16.mxu0 %v5172_v25  ;;  %v198_v24 = vld [vmem:[%s5560_s30 + $0xe0] sm:$0xff]  ;;  %v203_v25 = vld [vmem:[%s5560_s30 + $0x108] sm:$0xff]  ;;  %vm6355_vm13 = vmand %vm3713_vm6, %vm3754_vm11 }
  0x2d   : > { %v5243_v52 = vld [vmem:[%s6425_s1 + $0x260] ss:$12 sps:$4 sm:$0xff]   ;;  %v5248_v2 = vld [vmem:[%s6425_s1 + $0x288] ss:$12 sps:$4 sm:$0xff]   ;;  %vm3756_vm15 = vmor %vm6355_vm13, %vm6347_vm12 }
  0x2e   : > { %v231_v0 = vld [vmem:[%s5560_s30 + $0x1e8] sm:$0xff] }
  0x2f   : > { %1604 = vmatpush1.bf16.msra.mxu1 %v5174_v26  ;;  %1098 = vmatpush1.bf16.msra.mxu0 %v5175_v27  ;;  %v207_v26 = vld [vmem:[%s5560_s30 + $0x128] sm:$0xff]  ;;  %v5224_v27 = vld [vmem:[%s6425_s1 + $0x1f8] ss:$12 sps:$4 sm:$0xff]  }
  0x30   : > { %1605 = vmatprep.subr.bf16.mxu1 %v5387_v1  ;;  %1099 = vmatprep.subr.bf16.mxu0 %v5176_v28  ;;  %v5227_v28 = vld [vmem:[%s6425_s1 + $0x200] ss:$12 sps:$4 sm:$0xff]   ;;  %v363_v32 = vpack.c.bf16 %v207_v26, %v203_v25 }
  0x31   : > { %v235_v12 = vld [vmem:[%s5560_s30 + $0x208] sm:$0xff] }
  0x32   : > { %v239_v13 = vld [vmem:[%s5560_s30 + $0x228] sm:$0xff] }
  0x33   : > { %1606 = vmatpush1.bf16.msra.mxu1 %v5178_v29  ;;  %1100 = vmatpush1.bf16.msra.mxu0 %v5179_v30  ;;  %v5230_v29 = vld [vmem:[%s6425_s1 + $0x214] ss:$12 sps:$4 sm:$0xff]   ;;  %v358_v30 = vpack.c.bf16 %v198_v24, %v194_v23  ;;  %v251_v24 = vld [vmem:[%s5560_s30 + $0x288] sm:$0xff] }
  0x34   : > { %1607 = vmatprep.subr.bf16.mxu1 %v5387_v1  ;;  %1101 = vmatprep.subr.bf16.mxu0 %v5180_v31  ;;  %v5228_v31 = vld [vmem:[%s6425_s1 + $0x210] ss:$12 sps:$4 sm:$0xff]   ;;  %v246_v23 = vld [vmem:[%s5560_s30 + $0x260] sm:$0xff]  ;;  %v255_v25 = vld [vmem:[%s5560_s30 + $0x2a8] sm:$0xff] }
  0x37   : > { %1608 = vmatpush1.bf16.msra.mxu1 %v5182_v35  ;;  %1102 = vmatpush1.bf16.msra.mxu0 %v5183_v36  ;;  %v202_v35 = vld [vmem:[%s5560_s30 + $0x100] sm:$0xff] }
  0x38   : > { %1609 = vmatprep.subr.bf16.mxu1 %v5387_v1  ;;  %1103 = vmatprep.subr.bf16.mxu0 %v5184_v37  ;;  %v206_v36 = vld [vmem:[%s5560_s30 + $0x120] sm:$0xff]  ;;  %v211_v37 = vld [vmem:[%s5560_s30 + $0x148] sm:$0xff] }
  0x3b   : > { %1610 = vmatpush1.bf16.msra.mxu1 %v5186_v38  ;;  %1104 = vmatpush1.bf16.msra.mxu0 %v5187_v39  ;;  %v215_v38 = vld [vmem:[%s5560_s30 + $0x168] sm:$0xff] }
  0x3c   : > { %1611 = vmatprep.subr.bf16.mxu1 %v5387_v1  ;;  %1105 = vmatprep.subr.bf16.mxu0 %v5188_v40  ;;  %v5232_v39 = vld [vmem:[%s6425_s1 + $0x228] ss:$12 sps:$4 sm:$0xff]   ;;  %v5235_v40 = vld [vmem:[%s6425_s1 + $0x230] ss:$12 sps:$4 sm:$0xff]  }
  0x3f   : > { %1612 = vmatpush1.bf16.msra.mxu1 %v5190_v41  ;;  %1106 = vmatpush1.bf16.msra.mxu0 %v5191_v42  ;;  %v5238_v41 = vld [vmem:[%s6425_s1 + $0x244] ss:$12 sps:$4 sm:$0xff]   ;;  %v362_v42 = vpack.c.bf16 %v206_v36, %v202_v35  ;;  %v267_v36 = vld [vmem:[%s5560_s30 + $0x308] sm:$0xff] }
  0x40   : > { %1613 = vmatprep.subr.bf16.mxu1 %v5387_v1  ;;  %1107 = vmatprep.subr.bf16.mxu0 %v5192_v43  ;;  %v5236_v43 = vld [vmem:[%s6425_s1 + $0x240] ss:$12 sps:$4 sm:$0xff]  }
  0x41   : > { %v262_v35 = vld [vmem:[%s5560_s30 + $0x2e0] sm:$0xff] }
  0x43   : > { %1614 = vmatpush1.bf16.msra.mxu1 %v5194_v44  ;;  %1108 = vmatpush1.bf16.msra.mxu0 %v5195_v45  ;;  %v367_v44 = vpack.c.bf16 %v215_v38, %v211_v37  ;;  %v5239_v45 = vld [vmem:[%s6425_s1 + $0x248] ss:$12 sps:$4 sm:$0xff]  }
  0x44   : > { %1615 = vmatprep.subr.bf16.mxu1 %v5387_v1  ;;  %1109 = vmatprep.subr.bf16.mxu0 %v5196_v46  ;;  %v5242_v46 = vld [vmem:[%s6425_s1 + $0x25c] ss:$12 sps:$4 sm:$0xff]  }
  0x45   : > { %v271_v37 = vld [vmem:[%s5560_s30 + $0x328] sm:$0xff] }
  0x47   : > { %1616 = vmatpush1.bf16.msra.mxu1 %v5198_v47  ;;  %1110 = vmatpush1.bf16.msra.mxu0 %v5199_v48  ;;  %v210_v47 = vld [vmem:[%s5560_s30 + $0x140] sm:$0xff] }
  0x48   : > { %1617 = vmatprep.subr.bf16.mxu1 %v5387_v1  ;;  %1111 = vmatprep.subr.bf16.mxu0 %v5200_v49  ;;  %v214_v48 = vld [vmem:[%s5560_s30 + $0x160] sm:$0xff]  ;;  %v219_v49 = vld [vmem:[%s5560_s30 + $0x188] sm:$0xff] }
  0x49   : > { %v366_v54 = vpack.c.bf16 %v214_v48, %v210_v47  ;;  %v278_v47 = vld [vmem:[%s5560_s30 + $0x360] sm:$0xff]  ;;  %v283_v48 = vld [vmem:[%s5560_s30 + $0x388] sm:$0xff] }
  0x4b   : > { %1618 = vmatpush1.bf16.msra.mxu1 %v5202_v50  ;;  %1112 = vmatpush1.bf16.msra.mxu0 %v5203_v51  ;;  %v223_v50 = vld [vmem:[%s5560_s30 + $0x1a8] sm:$0xff]  ;;  %v5240_v51 = vld [vmem:[%s6425_s1 + $0x258] ss:$12 sps:$4 sm:$0xff]  }
  0x4c   : > { %1796 = vmatprep.subr.bf16.mxu1 %v5387_v1  ;;  %1334 = vmatprep.subr.bf16.mxu0 %v5206_v56  ;;  %v371_v56 = vpack.c.bf16 %v223_v50, %v219_v49  ;;  %v287_v49 = vld [vmem:[%s5560_s30 + $0x3a8] sm:$0xff] }
  0x4e   : > { %1620 = vmatmul.mubr.bf16.vlgmr.msra.gmra.mrb[0].mxu1 %v346_v57  ;;  %1114 = vmatmul.mubr.bf16.vlgmr.msra.gmra.mrb[0].mxu0 %v346_v57  ;;  %v5247_v57 = vld [vmem:[%s6425_s1 + $0x278] ss:$12 sps:$4 sm:$0xff]  }
  0x4f   : > { %1627 = vmatprep.mubr.bf16.mxu1 %v351_v58  ;;  %1123 = vmatprep.mubr.bf16.mxu0 %v351_v58  ;;  %v5250_v58 = vld [vmem:[%s6425_s1 + $0x28c] ss:$12 sps:$4 sm:$0xff]  }
  0x50   : > { %1335 = vmatpush1.bf16.msra.mxu0 %v5204_v59  ;;  %1797 = vmatpush1.bf16.msra.mxu1 %v5207_v60  ;;  %v218_v59 = vld [vmem:[%s5560_s30 + $0x180] sm:$0xff] }
  0x51   : > { %1336 = vmatprep.subr.bf16.mxu0 %v5210_v61  ;;  %1798 = vmatprep.subr.bf16.mxu1 %v5387_v1  ;;  %v222_v60 = vld [vmem:[%s5560_s30 + $0x1a0] sm:$0xff] }
  0x52   : > { %v546_v61 = vld [vmem:[%s6425_s1 + $0x2a0] sm:$0xff] }
  0x54   : > { %1337 = vmatpush1.bf16.msra.mxu0 %v5208_v3  ;;  %1799 = vmatpush1.bf16.msra.mxu1 %v5211_v4  ;;  %v3929_v3 = vcombine.low %v546_v61, %v546_v61  ;;  %v5251_v4 = vld [vmem:[%s6425_s1 + $0x290] ss:$12 sps:$4 sm:$0xff]  }
  0x55   : > { %1338 = vmatprep.subr.bf16.mxu0 %v5214_v5  ;;  %1800 = vmatprep.subr.bf16.mxu1 %v5387_v1  ;;  %v3930_v5 = vcombine.high %v546_v61, %v546_v61  ;;  %v303_v61 = vld [vmem:[%s5560_s30 + $0x428] sm:$0xff] }
  0x56   : > { %1628 = vmatmul.mubr.bf16.gmra.mrb[4].mxu1 %v350_v6  ;;  %1124 = vmatmul.mubr.bf16.gmra.mrb[4].mxu0 %v350_v6  ;;  %v370_v6 = vpack.c.bf16 %v222_v60, %v218_v59  ;;  %v294_v59 = vld [vmem:[%s5560_s30 + $0x3e0] sm:$0xff]  ;;  %v299_v60 = vld [vmem:[%s5560_s30 + $0x408] sm:$0xff] }
  0x57   : > { %1635 = vmatprep.mubr.bf16.mxu1 %v355_v7  ;;  %1133 = vmatprep.mubr.bf16.mxu0 %v355_v7  ;;  %v1079_v7 = vsel %vm1071_vm0, %v5253_v62, 0 }
  0x58   : > { %1339 = vmatpush1.bf16.msra.mxu0 %v5212_v8  ;;  %1801 = vmatpush1.bf16.msra.mxu1 %v5215_v9  ;;  %v1073_v8 = vsel %vm1071_vm0, %v3929_v3, 0  ;;  %v375_v9 = vpack.c.bf16 %v231_v0, %v227_v63  ;;  %v411_v63 = vpack.c.bf16 %v303_v61, %v299_v60  ;;  %v298_v0 = vld [vmem:[%s5560_s30 + $0x400] sm:$0xff]  ;;  %v307_v3 = vld [vmem:[%s5560_s30 + $0x448] sm:$0xff]  ;;  %v204_v61 = vld [vmem:[%s5560_s30 + $0x110] sm:$0xff] }
  0x59   : > { %1340 = vmatprep.subr.bf16.mxu0 %v5218_v10  ;;  %1802 = vmatprep.subr.bf16.mxu1 %v5387_v1  ;;  %v226_v10 = vld [vmem:[%s5560_s30 + $0x1c0] sm:$0xff] }
  0x5a   : > { %v374_v14 = vpack.c.bf16 %v230_v11, %v226_v10  ;;  %v319_v10 = vld [vmem:[%s5560_s30 + $0x4a8] sm:$0xff] }
  0x5c   : > { %1341 = vmatpush1.bf16.msra.mxu0 %v5216_v15  ;;  %1803 = vmatpush1.bf16.msra.mxu1 %v5219_v16  ;;  %v379_v15 = vpack.c.bf16 %v239_v13, %v235_v12  ;;  %v234_v16 = vld [vmem:[%s5560_s30 + $0x200] sm:$0xff] }
  0x5d   : > { %1342 = vmatprep.subr.bf16.mxu0 %v5222_v17  ;;  %1804 = vmatprep.subr.bf16.mxu1 %v5387_v1  ;;  %v238_v17 = vld [vmem:[%s5560_s30 + $0x220] sm:$0xff] }
  0x5e   : > { %1636 = vmatmul.mubr.bf16.gmra.mrb[8].mxu1 %v354_v18  ;;  %1134 = vmatmul.mubr.bf16.gmra.mrb[8].mxu0 %v354_v18  ;;  %v243_v18 = vld [vmem:[%s5560_s30 + $0x248] sm:$0xff]  ;;  %v314_v13 = vld [vmem:[%s5560_s30 + $0x480] sm:$0xff] }
  0x5f   : > { %1643 = vmatprep.mubr.bf16.mxu1 %v359_v20  ;;  %1143 = vmatprep.mubr.bf16.mxu0 %v359_v20  ;;  %v378_v20 = vpack.c.bf16 %v238_v17, %v234_v16  ;;  %v327_v16 = vld [vmem:[%s5560_s30 + $0x4e8] sm:$0xff] }
  0x60   : > { %1343 = vmatpush1.bf16.msra.mxu0 %v5220_v19  ;;  %1805 = vmatpush1.bf16.msra.mxu1 %v5223_v21  ;;  %v247_v19 = vld [vmem:[%s5560_s30 + $0x268] sm:$0xff] }
  0x61   : > { %1344 = vmatprep.subr.bf16.mxu0 %v5226_v22  ;;  %1806 = vmatprep.subr.bf16.mxu1 %v5387_v1  ;;  %v383_v21 = vpack.c.bf16 %v247_v19, %v243_v18  ;;  %v242_v22 = vld [vmem:[%s5560_s30 + $0x240] sm:$0xff] }
  0x62   : > { %v382_v26 = vpack.c.bf16 %v246_v23, %v242_v22  ;;  %v322_v19 = vld [vmem:[%s5560_s30 + $0x4c0] sm:$0xff]  ;;  %v335_v22 = vld [vmem:[%s5560_s30 + $0x528] sm:$0xff] }
  0x64   : > { %1345 = vmatpush1.bf16.msra.mxu0 %v5224_v27  ;;  %1807 = vmatpush1.bf16.msra.mxu1 %v5227_v28  ;;  %v387_v27 = vpack.c.bf16 %v255_v25, %v251_v24  ;;  %v250_v28 = vld [vmem:[%s5560_s30 + $0x280] sm:$0xff] }
  0x65   : > { %1346 = vmatprep.subr.bf16.mxu0 %v5230_v29  ;;  %1808 = vmatprep.subr.bf16.mxu1 %v5387_v1  ;;  %v254_v29 = vld [vmem:[%s5560_s30 + $0x2a0] sm:$0xff] }
  0x66   : > { %1644 = vmatmul.mubr.bf16.gmra.mrb[12].mxu1 %v358_v30  ;;  %1144 = vmatmul.mubr.bf16.gmra.mrb[12].mxu0 %v358_v30  ;;  %v259_v30 = vld [vmem:[%s5560_s30 + $0x2c8] sm:$0xff]  ;;  %v330_v25 = vld [vmem:[%s5560_s30 + $0x500] sm:$0xff] }
  0x67   : > { %1651 = vmatprep.mubr.bf16.mxu1 %v363_v32  ;;  %1153 = vmatprep.mubr.bf16.mxu0 %v363_v32  ;;  %v386_v32 = vpack.c.bf16 %v254_v29, %v250_v28  ;;  %v343_v28 = vld [vmem:[%s5560_s30 + $0x568] sm:$0x1] }
  0x68   : > { %1347 = vmatpush1.bf16.msra.mxu0 %v5228_v31  ;;  %1809 = vmatpush1.bf16.msra.mxu1 %v5231_v33  ;;  %v263_v31 = vld [vmem:[%s5560_s30 + $0x2e8] sm:$0xff] }
  0x69   : > { %1348 = vmatprep.subr.bf16.mxu0 %v5234_v34  ;;  %1810 = vmatprep.subr.bf16.mxu1 %v5387_v1  ;;  %v391_v33 = vpack.c.bf16 %v263_v31, %v259_v30  ;;  %v258_v34 = vld [vmem:[%s5560_s30 + $0x2c0] sm:$0xff] }
  0x6a   : > { %v390_v38 = vpack.c.bf16 %v262_v35, %v258_v34  ;;  %v338_v31 = vld [vmem:[%s5560_s30 + $0x540] sm:$0xff]  ;;  %v177_v34 = vld [vmem:[%s5560_s30 + $0x38] sm:$0xff] }
  0x6c   : > { %1349 = vmatpush1.bf16.msra.mxu0 %v5232_v39  ;;  %1811 = vmatpush1.bf16.msra.mxu1 %v5235_v40  ;;  %v395_v39 = vpack.c.bf16 %v271_v37, %v267_v36  ;;  %v266_v40 = vld [vmem:[%s5560_s30 + $0x300] sm:$0xff]  ;;  %v172_v37 = vld [vmem:[%s5560_s30 + $0x10] sm:$0xff] }
  0x6d   : > { %1350 = vmatprep.subr.bf16.mxu0 %v5238_v41  ;;  %1812 = vmatprep.subr.bf16.mxu1 %v5387_v1  ;;  %v270_v41 = vld [vmem:[%s5560_s30 + $0x320] sm:$0xff] }
  0x6e   : > { %1652 = vmatmul.mubr.bf16.gmra.mrb[16].mxu1 %v362_v42  ;;  %1154 = vmatmul.mubr.bf16.gmra.mrb[16].mxu0 %v362_v42  ;;  %v275_v42 = vld [vmem:[%s5560_s30 + $0x348] sm:$0xff] }
  0x6f   : > { %1659 = vmatprep.mubr.bf16.mxu1 %v367_v44  ;;  %1163 = vmatprep.mubr.bf16.mxu0 %v367_v44  ;;  %v394_v44 = vpack.c.bf16 %v270_v41, %v266_v40  ;;  %v185_v40 = vld [vmem:[%s5560_s30 + $0x78] sm:$0xff] }
  0x70   : > { %1351 = vmatpush1.bf16.msra.mxu0 %v5236_v43  ;;  %1813 = vmatpush1.bf16.msra.mxu1 %v5239_v45  ;;  %v279_v43 = vld [vmem:[%s5560_s30 + $0x368] sm:$0xff] }
  0x71   : > { %1352 = vmatprep.subr.bf16.mxu0 %v5242_v46  ;;  %1814 = vmatprep.subr.bf16.mxu1 %v5387_v1  ;;  %v399_v45 = vpack.c.bf16 %v279_v43, %v275_v42  ;;  %v274_v46 = vld [vmem:[%s5560_s30 + $0x340] sm:$0xff]  ;;  %v180_v43 = vld [vmem:[%s5560_s30 + $0x50] sm:$0xff] }
  0x72   : > { %v398_v50 = vpack.c.bf16 %v278_v47, %v274_v46  ;;  %v193_v46 = vld [vmem:[%s5560_s30 + $0xb8] sm:$0xff] }
  0x74   : > { %1353 = vmatpush1.bf16.msra.mxu0 %v5240_v51  ;;  %1815 = vmatpush1.bf16.msra.mxu1 %v5243_v52  ;;  %v403_v51 = vpack.c.bf16 %v287_v49, %v283_v48  ;;  %v282_v52 = vld [vmem:[%s5560_s30 + $0x380] sm:$0xff]  ;;  %v188_v49 = vld [vmem:[%s5560_s30 + $0x90] sm:$0xff] }
  0x75   : > { %1354 = vmatprep.subr.bf16.mxu0 %v5246_v53  ;;  %1816 = vmatprep.subr.bf16.mxu1 %v5387_v1  ;;  %v286_v53 = vld [vmem:[%s5560_s30 + $0x3a0] sm:$0xff] }
  0x76   : > { %1660 = vmatmul.mubr.bf16.gmra.mrb[20].mxu1 %v366_v54  ;;  %1164 = vmatmul.mubr.bf16.gmra.mrb[20].mxu0 %v366_v54  ;;  %v291_v54 = vld [vmem:[%s5560_s30 + $0x3c8] sm:$0xff] }
  0x77   : > { %1667 = vmatprep.mubr.bf16.mxu1 %v371_v56  ;;  %1173 = vmatprep.mubr.bf16.mxu0 %v371_v56  ;;  %v402_v56 = vpack.c.bf16 %v286_v53, %v282_v52  ;;  %v201_v52 = vld [vmem:[%s5560_s30 + $0xf8] sm:$0xff] }
  0x78   : > { %1355 = vmatpush1.bf16.msra.mxu0 %v5244_v55  ;;  %1817 = vmatpush1.bf16.msra.mxu1 %v5247_v57  ;;  %v295_v55 = vld [vmem:[%s5560_s30 + $0x3e8] sm:$0xff] }
  0x79   : > { %1356 = vmatprep.subr.bf16.mxu0 %v5250_v58  ;;  %1818 = vmatprep.subr.bf16.mxu1 %v5387_v1  ;;  %v407_v57 = vpack.c.bf16 %v295_v55, %v291_v54  ;;  %v290_v58 = vld [vmem:[%s5560_s30 + $0x3c0] sm:$0xff]  ;;  %v196_v55 = vld [vmem:[%s5560_s30 + $0xd0] sm:$0xff] }
  0x7a   : > { %v406_v62 = vpack.c.bf16 %v294_v59, %v290_v58  ;;  %v209_v58 = vld [vmem:[%s5560_s30 + $0x138] sm:$0xff] }
  0x7c   : > { %1357 = vmatpush1.bf16.msra.mxu0 %v5248_v2  ;;  %1819 = vmatpush1.bf16.msra.mxu1 %v5251_v4  ;;  %v302_v2 = vld [vmem:[%s5560_s30 + $0x420] sm:$0xff]  ;;  %v311_v4 = vld [vmem:[%s5560_s30 + $0x468] sm:$0xff] }
  0x7d   : > { %3932 = vmatprep.subr.msk.bf16.mxu0 %vm1071_vm0, %v3930_v5  ;;  %1820 = vmatprep.subr.bf16.mxu1 %v5387_v1  ;;  %v410_v5 = vpack.c.bf16 %v302_v2, %v298_v0  ;;  %v217_v0 = vld [vmem:[%s5560_s30 + $0x178] sm:$0xff] }
  0x7e   : > { %1668 = vmatmul.mubr.bf16.gmra.mrb[24].mxu1 %v370_v6  ;;  %1174 = vmatmul.mubr.bf16.gmra.mrb[24].mxu0 %v370_v6  ;;  %v415_v6 = vpack.c.bf16 %v311_v4, %v307_v3  ;;  %v212_v4 = vld [vmem:[%s5560_s30 + $0x150] sm:$0xff] }
  0x7f   : > { %1675 = vmatprep.mubr.bf16.mxu1 %v375_v9  ;;  %1183 = vmatprep.mubr.bf16.mxu0 %v375_v9  ;;  %v315_v9 = vld [vmem:[%s5560_s30 + $0x488] sm:$0xff] }
  0x80   : > { %1359 = vmatpush1.bf16.msra.mxu0 %v1073_v8  ;;  %1821 = vmatpush1.bf16.msra.mxu1 %v1079_v7  ;;  %v306_v7 = vld [vmem:[%s5560_s30 + $0x440] sm:$0xff]  ;;  %v419_v12 = vpack.c.bf16 %v319_v10, %v315_v9  ;;  %v220_v10 = vld [vmem:[%s5560_s30 + $0x190] sm:$0xff] }
  0x81   : > { %2864 = vmatprep.subr.bf16.mxu1 %v5387_v1  ;;  %v310_v8 = vld [vmem:[%s5560_s30 + $0x460] sm:$0xff] }
  0x82   : > { %v414_v11 = vpack.c.bf16 %v310_v8, %v306_v7  ;;  %v225_v7 = vld [vmem:[%s5560_s30 + $0x1b8] sm:$0xff] }
  0x86   : > { %1676 = vmatmul.mubr.bf16.gmra.mrb[28].mxu1 %v374_v14  ;;  %1184 = vmatmul.mubr.bf16.gmra.mrb[28].mxu0 %v374_v14  ;;  %v318_v14 = vld [vmem:[%s5560_s30 + $0x4a0] sm:$0xff] }
  0x87   : > { %1683 = vmatprep.mubr.bf16.mxu1 %v379_v15  ;;  %1193 = vmatprep.mubr.bf16.mxu0 %v379_v15  ;;  %v323_v15 = vld [vmem:[%s5560_s30 + $0x4c8] sm:$0xff]  ;;  %v418_v17 = vpack.c.bf16 %v318_v14, %v314_v13  ;;  %v233_v13 = vld [vmem:[%s5560_s30 + $0x1f8] sm:$0xff] }
  0x88   : > { %v423_v18 = vpack.c.bf16 %v327_v16, %v323_v15  ;;  %v228_v16 = vld [vmem:[%s5560_s30 + $0x1d0] sm:$0xff] }
  0x8e   : > { %1684 = vmatmul.mubr.bf16.gmra.mrb[32].mxu1 %v378_v20  ;;  %1194 = vmatmul.mubr.bf16.gmra.mrb[32].mxu0 %v378_v20  ;;  %v326_v20 = vld [vmem:[%s5560_s30 + $0x4e0] sm:$0xff] }
  0x8f   : > { %1691 = vmatprep.mubr.bf16.mxu1 %v383_v21  ;;  %1203 = vmatprep.mubr.bf16.mxu0 %v383_v21  ;;  %v331_v21 = vld [vmem:[%s5560_s30 + $0x508] sm:$0xff]  ;;  %v422_v23 = vpack.c.bf16 %v326_v20, %v322_v19  ;;  %v241_v19 = vld [vmem:[%s5560_s30 + $0x238] sm:$0xff] }
  0x90   : > { %v427_v24 = vpack.c.bf16 %v335_v22, %v331_v21  ;;  %v236_v22 = vld [vmem:[%s5560_s30 + $0x210] sm:$0xff] }
  0x96   : > { %1692 = vmatmul.mubr.bf16.gmra.mrb[36].mxu1 %v382_v26  ;;  %1204 = vmatmul.mubr.bf16.gmra.mrb[36].mxu0 %v382_v26  ;;  %v334_v26 = vld [vmem:[%s5560_s30 + $0x520] sm:$0xff] }
  0x97   : > { %1699 = vmatprep.mubr.bf16.mxu1 %v387_v27  ;;  %1213 = vmatprep.mubr.bf16.mxu0 %v387_v27  ;;  %v339_v27 = vld [vmem:[%s5560_s30 + $0x548] sm:$0xff]  ;;  %v426_v29 = vpack.c.bf16 %v334_v26, %v330_v25  ;;  %v249_v25 = vld [vmem:[%s5560_s30 + $0x278] sm:$0xff] }
  0x98   : > { %v431_v30 = vpack.c.bf16 %v343_v28, %v339_v27  ;;  %v244_v28 = vld [vmem:[%s5560_s30 + $0x250] sm:$0xff] }
  0x9e   : > { %1700 = vmatmul.mubr.bf16.gmra.mrb[40].mxu1 %v386_v32  ;;  %1214 = vmatmul.mubr.bf16.gmra.mrb[40].mxu0 %v386_v32  ;;  %v342_v32 = vld [vmem:[%s5560_s30 + $0x560] sm:$0x1] }
  0x9f   : > { %1707 = vmatprep.mubr.bf16.mxu1 %v391_v33  ;;  %1223 = vmatprep.mubr.bf16.mxu0 %v391_v33  ;;  %v173_v33 = vld [vmem:[%s5560_s30 + $0x18] sm:$0xff]  ;;  %v430_v35 = vpack.c.bf16 %v342_v32, %v338_v31 }
  0xa0   : > { %v349_v36 = vpack.c.bf16 %v177_v34, %v173_v33  ;;  %v257_v31 = vld [vmem:[%s5560_s30 + $0x2b8] sm:$0xff]  ;;  %v252_v34 = vld [vmem:[%s5560_s30 + $0x290] sm:$0xff] }
  0xa6   : > { %1708 = vmatmul.mubr.bf16.gmra.mrb[44].mxu1 %v390_v38  ;;  %1224 = vmatmul.mubr.bf16.gmra.mrb[44].mxu0 %v390_v38  ;;  %v176_v38 = vld [vmem:[%s5560_s30 + $0x30] sm:$0xff] }
  0xa7   : > { %1715 = vmatprep.mubr.bf16.mxu1 %v395_v39  ;;  %1233 = vmatprep.mubr.bf16.mxu0 %v395_v39  ;;  %v181_v39 = vld [vmem:[%s5560_s30 + $0x58] sm:$0xff]  ;;  %v348_v41 = vpack.c.bf16 %v176_v38, %v172_v37 }
  0xa8   : > { %v353_v42 = vpack.c.bf16 %v185_v40, %v181_v39  ;;  %v265_v37 = vld [vmem:[%s5560_s30 + $0x2f8] sm:$0xff]  ;;  %v260_v40 = vld [vmem:[%s5560_s30 + $0x2d0] sm:$0xff] }
  0xae   : > { %1716 = vmatmul.mubr.bf16.gmra.mrb[48].mxu1 %v394_v44  ;;  %1234 = vmatmul.mubr.bf16.gmra.mrb[48].mxu0 %v394_v44  ;;  %v184_v44 = vld [vmem:[%s5560_s30 + $0x70] sm:$0xff] }
  0xaf   : > { %1723 = vmatprep.mubr.bf16.mxu1 %v399_v45  ;;  %1243 = vmatprep.mubr.bf16.mxu0 %v399_v45  ;;  %v189_v45 = vld [vmem:[%s5560_s30 + $0x98] sm:$0xff]  ;;  %v352_v47 = vpack.c.bf16 %v184_v44, %v180_v43 }
  0xb0   : > { %v357_v48 = vpack.c.bf16 %v193_v46, %v189_v45  ;;  %v273_v43 = vld [vmem:[%s5560_s30 + $0x338] sm:$0xff]  ;;  %v268_v46 = vld [vmem:[%s5560_s30 + $0x310] sm:$0xff] }
  0xb6   : > { %1724 = vmatmul.mubr.bf16.gmra.mrb[52].mxu1 %v398_v50  ;;  %1244 = vmatmul.mubr.bf16.gmra.mrb[52].mxu0 %v398_v50  ;;  %v192_v50 = vld [vmem:[%s5560_s30 + $0xb0] sm:$0xff] }
  0xb7   : > { %1731 = vmatprep.mubr.bf16.mxu1 %v403_v51  ;;  %1253 = vmatprep.mubr.bf16.mxu0 %v403_v51  ;;  %v197_v51 = vld [vmem:[%s5560_s30 + $0xd8] sm:$0xff]  ;;  %v356_v53 = vpack.c.bf16 %v192_v50, %v188_v49 }
  0xb8   : > { %v361_v54 = vpack.c.bf16 %v201_v52, %v197_v51  ;;  %v281_v49 = vld [vmem:[%s5560_s30 + $0x378] sm:$0xff]  ;;  %v276_v52 = vld [vmem:[%s5560_s30 + $0x350] sm:$0xff] }
  0xbe   : > { %1732 = vmatmul.mubr.bf16.gmra.mrb[56].mxu1 %v402_v56  ;;  %1254 = vmatmul.mubr.bf16.gmra.mrb[56].mxu0 %v402_v56  ;;  %v200_v56 = vld [vmem:[%s5560_s30 + $0xf0] sm:$0xff] }
  0xbf   : > { %1739 = vmatprep.mubr.bf16.mxu1 %v407_v57  ;;  %1263 = vmatprep.mubr.bf16.mxu0 %v407_v57  ;;  %v205_v57 = vld [vmem:[%s5560_s30 + $0x118] sm:$0xff]  ;;  %v360_v59 = vpack.c.bf16 %v200_v56, %v196_v55 }
  0xc0   : > { %v365_v60 = vpack.c.bf16 %v209_v58, %v205_v57  ;;  %v289_v55 = vld [vmem:[%s5560_s30 + $0x3b8] sm:$0xff]  ;;  %v284_v58 = vld [vmem:[%s5560_s30 + $0x390] sm:$0xff] }
  0xc6   : > { %1740 = vmatmul.mubr.bf16.gmra.mrb[60].mxu1 %v406_v62  ;;  %1264 = vmatmul.mubr.bf16.gmra.mrb[60].mxu0 %v406_v62  ;;  %v208_v62 = vld [vmem:[%s5560_s30 + $0x130] sm:$0xff] }
  0xc7   : > { %1747 = vmatprep.mubr.bf16.mxu1 %v411_v63  ;;  %1273 = vmatprep.mubr.bf16.mxu0 %v411_v63  ;;  %v213_v63 = vld [vmem:[%s5560_s30 + $0x158] sm:$0xff]  ;;  %v364_v2 = vpack.c.bf16 %v208_v62, %v204_v61 }
  0xc8   : > { %v369_v3 = vpack.c.bf16 %v217_v0, %v213_v63  ;;  %v297_v61 = vld [vmem:[%s5560_s30 + $0x3f8] sm:$0xff]  ;;  %v292_v0 = vld [vmem:[%s5560_s30 + $0x3d0] sm:$0xff] }
  0xce   : > { %1748 = vmatmul.mubr.bf16.gmra.mrb[64].mxu1 %v410_v5  ;;  %1274 = vmatmul.mubr.bf16.gmra.mrb[64].mxu0 %v410_v5  ;;  %v216_v5 = vld [vmem:[%s5560_s30 + $0x170] sm:$0xff] }
  0xcf   : > { %1755 = vmatprep.mubr.bf16.mxu1 %v415_v6  ;;  %1283 = vmatprep.mubr.bf16.mxu0 %v415_v6  ;;  %v221_v6 = vld [vmem:[%s5560_s30 + $0x198] sm:$0xff]  ;;  %v368_v8 = vpack.c.bf16 %v216_v5, %v212_v4 }
  0xd0   : > { %v373_v9 = vpack.c.bf16 %v225_v7, %v221_v6  ;;  %v305_v4 = vld [vmem:[%s5560_s30 + $0x438] sm:$0xff]  ;;  %v300_v7 = vld [vmem:[%s5560_s30 + $0x410] sm:$0xff] }
  0xd6   : > { %1756 = vmatmul.mubr.bf16.gmra.mrb[68].mxu1 %v414_v11  ;;  %1284 = vmatmul.mubr.bf16.gmra.mrb[68].mxu0 %v414_v11  ;;  %v224_v11 = vld [vmem:[%s5560_s30 + $0x1b0] sm:$0xff] }
  0xd7   : > { %1763 = vmatprep.mubr.bf16.mxu1 %v419_v12  ;;  %1293 = vmatprep.mubr.bf16.mxu0 %v419_v12  ;;  %v229_v12 = vld [vmem:[%s5560_s30 + $0x1d8] sm:$0xff]  ;;  %v372_v14 = vpack.c.bf16 %v224_v11, %v220_v10 }
  0xd8   : > { %v377_v15 = vpack.c.bf16 %v233_v13, %v229_v12  ;;  %v313_v10 = vld [vmem:[%s5560_s30 + $0x478] sm:$0xff]  ;;  %v308_v13 = vld [vmem:[%s5560_s30 + $0x450] sm:$0xff] }
  0xde   : > { %1764 = vmatmul.mubr.bf16.gmra.mrb[72].mxu1 %v418_v17  ;;  %1294 = vmatmul.mubr.bf16.gmra.mrb[72].mxu0 %v418_v17  ;;  %v232_v17 = vld [vmem:[%s5560_s30 + $0x1f0] sm:$0xff] }
  0xdf   : > { %1771 = vmatprep.mubr.bf16.mxu1 %v423_v18  ;;  %1303 = vmatprep.mubr.bf16.mxu0 %v423_v18  ;;  %v237_v18 = vld [vmem:[%s5560_s30 + $0x218] sm:$0xff]  ;;  %v376_v20 = vpack.c.bf16 %v232_v17, %v228_v16 }
  0xe0   : > { %v381_v21 = vpack.c.bf16 %v241_v19, %v237_v18  ;;  %v321_v16 = vld [vmem:[%s5560_s30 + $0x4b8] sm:$0xff]  ;;  %v316_v19 = vld [vmem:[%s5560_s30 + $0x490] sm:$0xff] }
  0xe6   : > { %1772 = vmatmul.mubr.bf16.gmra.mrb[76].mxu1 %v422_v23  ;;  %1304 = vmatmul.mubr.bf16.gmra.mrb[76].mxu0 %v422_v23  ;;  %v240_v23 = vld [vmem:[%s5560_s30 + $0x230] sm:$0xff] }
  0xe7   : > { %1779 = vmatprep.mubr.bf16.mxu1 %v427_v24  ;;  %1313 = vmatprep.mubr.bf16.mxu0 %v427_v24  ;;  %v245_v24 = vld [vmem:[%s5560_s30 + $0x258] sm:$0xff]  ;;  %v380_v26 = vpack.c.bf16 %v240_v23, %v236_v22 }
  0xe8   : > { %v385_v27 = vpack.c.bf16 %v249_v25, %v245_v24  ;;  %v329_v22 = vld [vmem:[%s5560_s30 + $0x4f8] sm:$0xff]  ;;  %v324_v25 = vld [vmem:[%s5560_s30 + $0x4d0] sm:$0xff] }
  0xee   : > { %1780 = vmatmul.mubr.bf16.gmra.mrb[80].mxu1 %v426_v29  ;;  %1314 = vmatmul.mubr.bf16.gmra.mrb[80].mxu0 %v426_v29  ;;  %v248_v29 = vld [vmem:[%s5560_s30 + $0x270] sm:$0xff] }
  0xef   : > { %1787 = vmatprep.mubr.bf16.mxu1 %v431_v30  ;;  %1323 = vmatprep.mubr.bf16.mxu0 %v431_v30  ;;  %v253_v30 = vld [vmem:[%s5560_s30 + $0x298] sm:$0xff]  ;;  %v384_v32 = vpack.c.bf16 %v248_v29, %v244_v28 }
  0xf0   : > { %v389_v33 = vpack.c.bf16 %v257_v31, %v253_v30  ;;  %v337_v28 = vld [vmem:[%s5560_s30 + $0x538] sm:$0xff]  ;;  %v332_v31 = vld [vmem:[%s5560_s30 + $0x510] sm:$0xff] }
  0xf6   : > { %1788 = vmatmul.mubr.bf16.gmra.mrb[84].mxu1 %v430_v35  ;;  %1324 = vmatmul.mubr.bf16.gmra.mrb[84].mxu0 %v430_v35  ;;  %v256_v35 = vld [vmem:[%s5560_s30 + $0x2b0] sm:$0xff] }
  0xf7   : > { %3955 = vmatprep.mubr.msk.bf16.mxu1 %vm1004_vm1, %v349_v36  ;;  %3933 = vmatprep.mubr.msk.bf16.mxu0 %vm1004_vm1, %v349_v36  ;;  %v261_v36 = vld [vmem:[%s5560_s30 + $0x2d8] sm:$0xff]  ;;  %v388_v38 = vpack.c.bf16 %v256_v35, %v252_v34 }
  0xf8   : > { %v393_v39 = vpack.c.bf16 %v265_v37, %v261_v36  ;;  %v345_v34 = vld [vmem:[%s5560_s30 + $0x578] sm:$0x1]  ;;  %v340_v37 = vld [vmem:[%s5560_s30 + $0x550] sm:$0xff] }
  0xfe   : > { %1829 = vmatmul.mubr.bf16.vlgmr.msra.gmra.mrb[0].mxu1 %v348_v41  ;;  %1367 = vmatmul.mubr.bf16.vlgmr.msra.gmra.mrb[0].mxu0 %v348_v41  ;;  %v264_v41 = vld [vmem:[%s5560_s30 + $0x2f0] sm:$0xff] }
  0xff   : > { %3956 = vmatprep.mubr.msk.bf16.mxu1 %vm1004_vm1, %v353_v42  ;;  %3934 = vmatprep.mubr.msk.bf16.mxu0 %vm1004_vm1, %v353_v42  ;;  %v269_v42 = vld [vmem:[%s5560_s30 + $0x318] sm:$0xff]  ;;  %v392_v44 = vpack.c.bf16 %v264_v41, %v260_v40  ;;  %v5257_v40 = vld [vmem:[%s6426_s2 + $0x4] ss:$12 sps:$4 sm:$0xff]  }
 0x100   : > { %v397_v45 = vpack.c.bf16 %v273_v43, %v269_v42 }
 0x106   : > { %1837 = vmatmul.mubr.bf16.gmra.mrb[4].mxu1 %v352_v47  ;;  %1377 = vmatmul.mubr.bf16.gmra.mrb[4].mxu0 %v352_v47  ;;  %v272_v47 = vld [vmem:[%s5560_s30 + $0x330] sm:$0xff] }
 0x107   : > { %3957 = vmatprep.mubr.msk.bf16.mxu1 %vm1004_vm1, %v357_v48  ;;  %3935 = vmatprep.mubr.msk.bf16.mxu0 %vm1004_vm1, %v357_v48  ;;  %v277_v48 = vld [vmem:[%s5560_s30 + $0x358] sm:$0xff]  ;;  %v396_v50 = vpack.c.bf16 %v272_v47, %v268_v46 }
 0x108   : > { %v401_v51 = vpack.c.bf16 %v281_v49, %v277_v48 }
 0x10e   : > { %1845 = vmatmul.mubr.bf16.gmra.mrb[8].mxu1 %v356_v53  ;;  %1387 = vmatmul.mubr.bf16.gmra.mrb[8].mxu0 %v356_v53  ;;  %v280_v53 = vld [vmem:[%s5560_s30 + $0x370] sm:$0xff] }
 0x10f   : > { %3958 = vmatprep.mubr.msk.bf16.mxu1 %vm1004_vm1, %v361_v54  ;;  %3936 = vmatprep.mubr.msk.bf16.mxu0 %vm1004_vm1, %v361_v54  ;;  %v285_v54 = vld [vmem:[%s5560_s30 + $0x398] sm:$0xff]  ;;  %v400_v56 = vpack.c.bf16 %v280_v53, %v276_v52 }
 0x110   : > { %v405_v57 = vpack.c.bf16 %v289_v55, %v285_v54 }
 0x116   : > { %1853 = vmatmul.mubr.bf16.gmra.mrb[12].mxu1 %v360_v59  ;;  %1397 = vmatmul.mubr.bf16.gmra.mrb[12].mxu0 %v360_v59  ;;  %v288_v59 = vld [vmem:[%s5560_s30 + $0x3b0] sm:$0xff] }
 0x117   : > { %3959 = vmatprep.mubr.msk.bf16.mxu1 %vm1004_vm1, %v365_v60  ;;  %3937 = vmatprep.mubr.msk.bf16.mxu0 %vm1004_vm1, %v365_v60  ;;  %v293_v60 = vld [vmem:[%s5560_s30 + $0x3d8] sm:$0xff]  ;;  %v404_v62 = vpack.c.bf16 %v288_v59, %v284_v58 }
 0x118   : > { %v409_v63 = vpack.c.bf16 %v297_v61, %v293_v60 }
 0x11e   : > { %1861 = vmatmul.mubr.bf16.gmra.mrb[16].mxu1 %v364_v2  ;;  %1407 = vmatmul.mubr.bf16.gmra.mrb[16].mxu0 %v364_v2  ;;  %v296_v2 = vld [vmem:[%s5560_s30 + $0x3f0] sm:$0xff] }
 0x11f   : > { %3960 = vmatprep.mubr.msk.bf16.mxu1 %vm1004_vm1, %v369_v3  ;;  %3938 = vmatprep.mubr.msk.bf16.mxu0 %vm1004_vm1, %v369_v3  ;;  %v301_v3 = vld [vmem:[%s5560_s30 + $0x418] sm:$0xff]  ;;  %v408_v5 = vpack.c.bf16 %v296_v2, %v292_v0 }
 0x120   : > { %v413_v6 = vpack.c.bf16 %v305_v4, %v301_v3 }
 0x126   : > { %1869 = vmatmul.mubr.bf16.gmra.mrb[20].mxu1 %v368_v8  ;;  %1417 = vmatmul.mubr.bf16.gmra.mrb[20].mxu0 %v368_v8  ;;  %v304_v8 = vld [vmem:[%s5560_s30 + $0x430] sm:$0xff] }
 0x127   : > { %3961 = vmatprep.mubr.msk.bf16.mxu1 %vm1004_vm1, %v373_v9  ;;  %3939 = vmatprep.mubr.msk.bf16.mxu0 %vm1004_vm1, %v373_v9  ;;  %v309_v9 = vld [vmem:[%s5560_s30 + $0x458] sm:$0xff]  ;;  %v412_v11 = vpack.c.bf16 %v304_v8, %v300_v7 }
 0x128   : > { %v417_v12 = vpack.c.bf16 %v313_v10, %v309_v9 }
 0x12e   : > { %1877 = vmatmul.mubr.bf16.gmra.mrb[24].mxu1 %v372_v14  ;;  %1427 = vmatmul.mubr.bf16.gmra.mrb[24].mxu0 %v372_v14  ;;  %v312_v14 = vld [vmem:[%s5560_s30 + $0x470] sm:$0xff] }
 0x12f   : > { %3962 = vmatprep.mubr.msk.bf16.mxu1 %vm1004_vm1, %v377_v15  ;;  %3940 = vmatprep.mubr.msk.bf16.mxu0 %vm1004_vm1, %v377_v15  ;;  %v317_v15 = vld [vmem:[%s5560_s30 + $0x498] sm:$0xff]  ;;  %v416_v17 = vpack.c.bf16 %v312_v14, %v308_v13 }
 0x130   : > { %v421_v18 = vpack.c.bf16 %v321_v16, %v317_v15 }
 0x136   : > { %1885 = vmatmul.mubr.bf16.gmra.mrb[28].mxu1 %v376_v20  ;;  %1437 = vmatmul.mubr.bf16.gmra.mrb[28].mxu0 %v376_v20  ;;  %v320_v20 = vld [vmem:[%s5560_s30 + $0x4b0] sm:$0xff] }
 0x137   : > { %3963 = vmatprep.mubr.msk.bf16.mxu1 %vm1004_vm1, %v381_v21  ;;  %3941 = vmatprep.mubr.msk.bf16.mxu0 %vm1004_vm1, %v381_v21  ;;  %v325_v21 = vld [vmem:[%s5560_s30 + $0x4d8] sm:$0xff]  ;;  %v420_v23 = vpack.c.bf16 %v320_v20, %v316_v19 }
 0x138   : > { %v425_v24 = vpack.c.bf16 %v329_v22, %v325_v21 }
 0x13e   : > { %1893 = vmatmul.mubr.bf16.gmra.mrb[32].mxu1 %v380_v26  ;;  %1447 = vmatmul.mubr.bf16.gmra.mrb[32].mxu0 %v380_v26  ;;  %v328_v26 = vld [vmem:[%s5560_s30 + $0x4f0] sm:$0xff] }
 0x13f   : > { %3964 = vmatprep.mubr.msk.bf16.mxu1 %vm1004_vm1, %v385_v27  ;;  %3942 = vmatprep.mubr.msk.bf16.mxu0 %vm1004_vm1, %v385_v27  ;;  %v333_v27 = vld [vmem:[%s5560_s30 + $0x518] sm:$0xff]  ;;  %v424_v29 = vpack.c.bf16 %v328_v26, %v324_v25 }
 0x140   : > { %v429_v30 = vpack.c.bf16 %v337_v28, %v333_v27 }
 0x146   : > { %1901 = vmatmul.mubr.bf16.gmra.mrb[36].mxu1 %v384_v32  ;;  %1457 = vmatmul.mubr.bf16.gmra.mrb[36].mxu0 %v384_v32  ;;  %v336_v32 = vld [vmem:[%s5560_s30 + $0x530] sm:$0xff] }
 0x147   : > { %3965 = vmatprep.mubr.msk.bf16.mxu1 %vm1004_vm1, %v389_v33  ;;  %3943 = vmatprep.mubr.msk.bf16.mxu0 %vm1004_vm1, %v389_v33  ;;  %v341_v33 = vld [vmem:[%s5560_s30 + $0x558] sm:$0xff]  ;;  %v428_v35 = vpack.c.bf16 %v336_v32, %v332_v31 }
 0x148   : > { %v433_v36 = vpack.c.bf16 %v345_v34, %v341_v33 }
 0x14e   : > { %1909 = vmatmul.mubr.bf16.gmra.mrb[40].mxu1 %v388_v38  ;;  %1467 = vmatmul.mubr.bf16.gmra.mrb[40].mxu0 %v388_v38  ;;  %v344_v38 = vld [vmem:[%s5560_s30 + $0x570] sm:$0x1]  ;;  %s5323_s30 = scalar_lea.vmem %s6375_s25, 3264 }
 0x14f   : > { %3966 = vmatprep.mubr.msk.bf16.mxu1 %vm1004_vm1, %v393_v39  ;;  %3944 = vmatprep.mubr.msk.bf16.mxu0 %vm1004_vm1, %v393_v39  ;;  %v432_v39 = vpack.c.bf16 %v344_v38, %v340_v37  ;;  %p5324_p11 = scmp.ne.s32.totalorder %s6375_s25, %s5323_s30  ;;  %p5331_p1 = scmp.lt.s32.totalorder %s5329_s5, %s5323_s30 }
 0x151   : > { %p5325_p12 = pnand %p5324_p11, %p5452_p5  ;;  %p5332_p2 = por %p5331_p1, %p5330_p0 }
 0x153   : > { %p5326_p13 = pneg %p5325_p12 }
 0x155   : > { %p5333_p3 = pnand %p5332_p2, %p5326_p13 }
 0x156   : > { %1917 = vmatmul.mubr.bf16.gmra.mrb[44].mxu1 %v392_v44  ;;  %1477 = vmatmul.mubr.bf16.gmra.mrb[44].mxu0 %v392_v44 }
 0x157   : > { %3967 = vmatprep.mubr.msk.bf16.mxu1 %vm1004_vm1, %v397_v45  ;;  %3945 = vmatprep.mubr.msk.bf16.mxu0 %vm1004_vm1, %v397_v45 }
 0x15e   : > { %1925 = vmatmul.mubr.bf16.gmra.mrb[48].mxu1 %v396_v50  ;;  %1487 = vmatmul.mubr.bf16.gmra.mrb[48].mxu0 %v396_v50 }
 0x15f   : > { %3968 = vmatprep.mubr.msk.bf16.mxu1 %vm1004_vm1, %v401_v51  ;;  %3946 = vmatprep.mubr.msk.bf16.mxu0 %vm1004_vm1, %v401_v51 }
 0x166   : > { %1933 = vmatmul.mubr.bf16.gmra.mrb[52].mxu1 %v400_v56  ;;  %1497 = vmatmul.mubr.bf16.gmra.mrb[52].mxu0 %v400_v56 }
 0x167   : > { %3969 = vmatprep.mubr.msk.bf16.mxu1 %vm1004_vm1, %v405_v57  ;;  %3947 = vmatprep.mubr.msk.bf16.mxu0 %vm1004_vm1, %v405_v57 }
 0x16e   : > { %1941 = vmatmul.mubr.bf16.gmra.mrb[56].mxu1 %v404_v62  ;;  %1507 = vmatmul.mubr.bf16.gmra.mrb[56].mxu0 %v404_v62 }
 0x16f   : > { %3970 = vmatprep.mubr.msk.bf16.mxu1 %vm1004_vm1, %v409_v63  ;;  %3948 = vmatprep.mubr.msk.bf16.mxu0 %vm1004_vm1, %v409_v63 }
 0x176   : > { %1949 = vmatmul.mubr.bf16.gmra.mrb[60].mxu1 %v408_v5  ;;  %1517 = vmatmul.mubr.bf16.gmra.mrb[60].mxu0 %v408_v5 }
 0x177   : > { %3971 = vmatprep.mubr.msk.bf16.mxu1 %vm1004_vm1, %v413_v6  ;;  %3949 = vmatprep.mubr.msk.bf16.mxu0 %vm1004_vm1, %v413_v6 }
 0x17e   : > { %1957 = vmatmul.mubr.bf16.gmra.mrb[64].mxu1 %v412_v11  ;;  %1527 = vmatmul.mubr.bf16.gmra.mrb[64].mxu0 %v412_v11 }
 0x17f   : > { %3972 = vmatprep.mubr.msk.bf16.mxu1 %vm1004_vm1, %v417_v12  ;;  %3950 = vmatprep.mubr.msk.bf16.mxu0 %vm1004_vm1, %v417_v12 }
 0x186   : > { %1965 = vmatmul.mubr.bf16.gmra.mrb[68].mxu1 %v416_v17  ;;  %1537 = vmatmul.mubr.bf16.gmra.mrb[68].mxu0 %v416_v17 }
 0x187   : > { %3973 = vmatprep.mubr.msk.bf16.mxu1 %vm1004_vm1, %v421_v18  ;;  %3951 = vmatprep.mubr.msk.bf16.mxu0 %vm1004_vm1, %v421_v18 }
 0x18e   : > { %1973 = vmatmul.mubr.bf16.gmra.mrb[72].mxu1 %v420_v23  ;;  %1547 = vmatmul.mubr.bf16.gmra.mrb[72].mxu0 %v420_v23 }
 0x18f   : > { %3974 = vmatprep.mubr.msk.bf16.mxu1 %vm1004_vm1, %v425_v24  ;;  %3952 = vmatprep.mubr.msk.bf16.mxu0 %vm1004_vm1, %v425_v24 }
 0x196   : > { %1981 = vmatmul.mubr.bf16.gmra.mrb[76].mxu1 %v424_v29  ;;  %1557 = vmatmul.mubr.bf16.gmra.mrb[76].mxu0 %v424_v29 }
 0x197   : > { %3975 = vmatprep.mubr.msk.bf16.mxu1 %vm1004_vm1, %v429_v30  ;;  %3953 = vmatprep.mubr.msk.bf16.mxu0 %vm1004_vm1, %v429_v30 }
 0x19e   : > { %1989 = vmatmul.mubr.bf16.gmra.mrb[80].mxu1 %v428_v35  ;;  %1567 = vmatmul.mubr.bf16.gmra.mrb[80].mxu0 %v428_v35 }
 0x19f   : > { %3976 = vmatprep.mubr.msk.bf16.mxu1 %vm1004_vm1, %v433_v36  ;;  %3954 = vmatprep.mubr.msk.bf16.mxu0 %vm1004_vm1, %v433_v36 }
 0x1a6   : > { %1997 = vmatmul.mubr.bf16.gmra.mrb[84].mxu1 %v432_v39  ;;  %1577 = vmatmul.mubr.bf16.gmra.mrb[84].mxu0 %v432_v39 }
 0x1a7   : > { %2896 = vmatprep.mubr.bf16.mxu1 %v5257_v40  ;;  %2490 = vmatprep.mubr.bf16.mxu0 %v5257_v40 }
 0x1d1   : > { %v1830_v41 = vpop.f32.mrb[0].mxu1  ;;  %v1368_v42 = vpop.f32.mrb[0].mxu0 }
 0x1d2   : > { %v1832_v43 = vpop.f32.mrb[1].mxu1  ;;  %v1370_v44 = vpop.f32.mrb[1].mxu0 }
 0x1d3   : > { %v1833_v45 = vpop.f32.mrb[2].mxu1  ;;  %v1372_v47 = vpop.f32.mrb[2].mxu0 }
 0x1d4   : > { %v2075_v46 = vpack.c.bf16 %v1833_v45, %v1830_v41  ;;  %v1835_v48 = vpop.f32.mrb[3].mxu1  ;;  %v2073_v49 = vpack.c.bf16 %v1372_v47, %v1368_v42  ;;  %v1374_v50 = vpop.f32.mrb[3].mxu0 }
 0x1d5   : > { %v2074_v51 = vpack.c.bf16 %v1374_v50, %v1370_v44 }
 0x1d6   : > { %2865 = vmatpush1.bf16.msra.mxu1 %v2075_v46 }
 0x1d7   : > { %2866 = vmatprep.subr.bf16.mxu1 %v5387_v1  ;;  %2458 = vmatprep.subr.bf16.mxu0 %v2074_v51 }
 0x1d8   : > { %2459 = vmatpush1.bf16.msra.mxu0 %v2073_v49 }
 0x1d9   : > { %v1838_v52 = vpop.f32.mrb[4].mxu1  ;;  %v1378_v53 = vpop.f32.mrb[4].mxu0 }
 0x1da   : > { %v1840_v54 = vpop.f32.mrb[5].mxu1  ;;  %v1380_v55 = vpop.f32.mrb[5].mxu0 }
 0x1db   : > { %v1841_v56 = vpop.f32.mrb[6].mxu1  ;;  %v1382_v58 = vpop.f32.mrb[6].mxu0 }
 0x1dc   : > { %v2078_v57 = vpack.c.bf16 %v1841_v56, %v1838_v52  ;;  %v1843_v59 = vpop.f32.mrb[7].mxu1  ;;  %v2076_v60 = vpack.c.bf16 %v1382_v58, %v1378_v53  ;;  %v1384_v61 = vpop.f32.mrb[7].mxu0 }
 0x1dd   : > { %v2077_v62 = vpack.c.bf16 %v1384_v61, %v1380_v55 }
 0x1de   : > { %2867 = vmatpush1.bf16.msra.mxu1 %v2078_v57 }
 0x1df   : > { %2868 = vmatprep.subr.bf16.mxu1 %v5387_v1  ;;  %2460 = vmatprep.subr.bf16.mxu0 %v2077_v62 }
 0x1e0   : > { %2461 = vmatpush1.bf16.msra.mxu0 %v2076_v60 }
 0x1e1   : > { %v1846_v63 = vpop.f32.mrb[8].mxu1  ;;  %v1388_v0 = vpop.f32.mrb[8].mxu0 }
 0x1e2   : > { %v1848_v2 = vpop.f32.mrb[9].mxu1  ;;  %v1390_v3 = vpop.f32.mrb[9].mxu0 }
 0x1e3   : > { %v1849_v4 = vpop.f32.mrb[10].mxu1  ;;  %v1392_v6 = vpop.f32.mrb[10].mxu0 }
 0x1e4   : > { %v2081_v5 = vpack.c.bf16 %v1849_v4, %v1846_v63  ;;  %v1851_v7 = vpop.f32.mrb[11].mxu1  ;;  %v2079_v8 = vpack.c.bf16 %v1392_v6, %v1388_v0  ;;  %v1394_v9 = vpop.f32.mrb[11].mxu0 }
 0x1e5   : > { %v2080_v10 = vpack.c.bf16 %v1394_v9, %v1390_v3 }
 0x1e6   : > { %2869 = vmatpush1.bf16.msra.mxu1 %v2081_v5 }
 0x1e7   : > { %2870 = vmatprep.subr.bf16.mxu1 %v5387_v1  ;;  %2462 = vmatprep.subr.bf16.mxu0 %v2080_v10 }
 0x1e8   : > { %2463 = vmatpush1.bf16.msra.mxu0 %v2079_v8 }
 0x1e9   : > { %v1854_v11 = vpop.f32.mrb[12].mxu1  ;;  %v1398_v12 = vpop.f32.mrb[12].mxu0 }
 0x1ea   : > { %v1856_v13 = vpop.f32.mrb[13].mxu1  ;;  %v1400_v14 = vpop.f32.mrb[13].mxu0 }
 0x1eb   : > { %v1857_v15 = vpop.f32.mrb[14].mxu1  ;;  %v1402_v17 = vpop.f32.mrb[14].mxu0 }
 0x1ec   : > { %v2084_v16 = vpack.c.bf16 %v1857_v15, %v1854_v11  ;;  %v1859_v18 = vpop.f32.mrb[15].mxu1  ;;  %v2082_v19 = vpack.c.bf16 %v1402_v17, %v1398_v12  ;;  %v1404_v20 = vpop.f32.mrb[15].mxu0 }
 0x1ed   : > { %v2083_v21 = vpack.c.bf16 %v1404_v20, %v1400_v14 }
 0x1ee   : > { %2871 = vmatpush1.bf16.msra.mxu1 %v2084_v16 }
 0x1ef   : > { %2872 = vmatprep.subr.bf16.mxu1 %v5387_v1  ;;  %2464 = vmatprep.subr.bf16.mxu0 %v2083_v21 }
 0x1f0   : > { %2465 = vmatpush1.bf16.msra.mxu0 %v2082_v19 }
 0x1f1   : > { %v1862_v22 = vpop.f32.mrb[16].mxu1  ;;  %v1408_v23 = vpop.f32.mrb[16].mxu0 }
 0x1f2   : > { %v1864_v24 = vpop.f32.mrb[17].mxu1  ;;  %v1410_v25 = vpop.f32.mrb[17].mxu0 }
 0x1f3   : > { %v1865_v26 = vpop.f32.mrb[18].mxu1  ;;  %v1412_v28 = vpop.f32.mrb[18].mxu0 }
 0x1f4   : > { %v2087_v27 = vpack.c.bf16 %v1865_v26, %v1862_v22  ;;  %v1867_v29 = vpop.f32.mrb[19].mxu1  ;;  %v2085_v30 = vpack.c.bf16 %v1412_v28, %v1408_v23  ;;  %v1414_v31 = vpop.f32.mrb[19].mxu0 }
 0x1f5   : > { %v2086_v32 = vpack.c.bf16 %v1414_v31, %v1410_v25 }
 0x1f6   : > { %2873 = vmatpush1.bf16.msra.mxu1 %v2087_v27 }
 0x1f7   : > { %2874 = vmatprep.subr.bf16.mxu1 %v5387_v1  ;;  %2466 = vmatprep.subr.bf16.mxu0 %v2086_v32 }
 0x1f8   : > { %2467 = vmatpush1.bf16.msra.mxu0 %v2085_v30 }
 0x1f9   : > { %v1870_v33 = vpop.f32.mrb[20].mxu1  ;;  %v1418_v34 = vpop.f32.mrb[20].mxu0 }
 0x1fa   : > { %v1872_v35 = vpop.f32.mrb[21].mxu1  ;;  %v1420_v36 = vpop.f32.mrb[21].mxu0 }
 0x1fb   : > { %v1873_v37 = vpop.f32.mrb[22].mxu1  ;;  %v1422_v39 = vpop.f32.mrb[22].mxu0 }
 0x1fc   : > { %v2090_v38 = vpack.c.bf16 %v1873_v37, %v1870_v33  ;;  %v1875_v40 = vpop.f32.mrb[23].mxu1  ;;  %v2088_v41 = vpack.c.bf16 %v1422_v39, %v1418_v34  ;;  %v1424_v42 = vpop.f32.mrb[23].mxu0 }
 0x1fd   : > { %v2089_v43 = vpack.c.bf16 %v1424_v42, %v1420_v36 }
 0x1fe   : > { %2875 = vmatpush1.bf16.msra.mxu1 %v2090_v38 }
 0x1ff   : > { %2876 = vmatprep.subr.bf16.mxu1 %v5387_v1  ;;  %2468 = vmatprep.subr.bf16.mxu0 %v2089_v43 }
 0x200   : > { %2469 = vmatpush1.bf16.msra.mxu0 %v2088_v41 }
 0x201   : > { %v1878_v44 = vpop.f32.mrb[24].mxu1  ;;  %v1428_v45 = vpop.f32.mrb[24].mxu0 }
 0x202   : > { %v1880_v46 = vpop.f32.mrb[25].mxu1  ;;  %v1430_v47 = vpop.f32.mrb[25].mxu0 }
 0x203   : > { %v1881_v48 = vpop.f32.mrb[26].mxu1  ;;  %v1432_v50 = vpop.f32.mrb[26].mxu0 }
 0x204   : > { %v2093_v49 = vpack.c.bf16 %v1881_v48, %v1878_v44  ;;  %v1883_v51 = vpop.f32.mrb[27].mxu1  ;;  %v2091_v52 = vpack.c.bf16 %v1432_v50, %v1428_v45  ;;  %v1434_v53 = vpop.f32.mrb[27].mxu0 }
 0x205   : > { %v2092_v54 = vpack.c.bf16 %v1434_v53, %v1430_v47 }
 0x206   : > { %2877 = vmatpush1.bf16.msra.mxu1 %v2093_v49 }
 0x207   : > { %2878 = vmatprep.subr.bf16.mxu1 %v5387_v1  ;;  %2470 = vmatprep.subr.bf16.mxu0 %v2092_v54 }
 0x208   : > { %2471 = vmatpush1.bf16.msra.mxu0 %v2091_v52 }
 0x209   : > { %v1886_v55 = vpop.f32.mrb[28].mxu1  ;;  %v1438_v56 = vpop.f32.mrb[28].mxu0 }
 0x20a   : > { %v1888_v57 = vpop.f32.mrb[29].mxu1  ;;  %v1440_v58 = vpop.f32.mrb[29].mxu0 }
 0x20b   : > { %v1889_v59 = vpop.f32.mrb[30].mxu1  ;;  %v1442_v61 = vpop.f32.mrb[30].mxu0 }
 0x20c   : > { %v2096_v60 = vpack.c.bf16 %v1889_v59, %v1886_v55  ;;  %v1891_v62 = vpop.f32.mrb[31].mxu1  ;;  %v2094_v63 = vpack.c.bf16 %v1442_v61, %v1438_v56  ;;  %v1444_v0 = vpop.f32.mrb[31].mxu0 }
 0x20d   : > { %v2095_v2 = vpack.c.bf16 %v1444_v0, %v1440_v58 }
 0x20e   : > { %2879 = vmatpush1.bf16.msra.mxu1 %v2096_v60 }
 0x20f   : > { %2880 = vmatprep.subr.bf16.mxu1 %v5387_v1  ;;  %2472 = vmatprep.subr.bf16.mxu0 %v2095_v2 }
 0x210   : > { %2473 = vmatpush1.bf16.msra.mxu0 %v2094_v63 }
 0x211   : > { %v1894_v3 = vpop.f32.mrb[32].mxu1  ;;  %v1448_v4 = vpop.f32.mrb[32].mxu0 }
 0x212   : > { %v1896_v5 = vpop.f32.mrb[33].mxu1  ;;  %v1450_v6 = vpop.f32.mrb[33].mxu0 }
 0x213   : > { %v1897_v7 = vpop.f32.mrb[34].mxu1  ;;  %v1452_v9 = vpop.f32.mrb[34].mxu0 }
 0x214   : > { %v2099_v8 = vpack.c.bf16 %v1897_v7, %v1894_v3  ;;  %v1899_v10 = vpop.f32.mrb[35].mxu1  ;;  %v2097_v11 = vpack.c.bf16 %v1452_v9, %v1448_v4  ;;  %v1454_v12 = vpop.f32.mrb[35].mxu0 }
 0x215   : > { %v2098_v13 = vpack.c.bf16 %v1454_v12, %v1450_v6 }
 0x216   : > { %2881 = vmatpush1.bf16.msra.mxu1 %v2099_v8 }
 0x217   : > { %2882 = vmatprep.subr.bf16.mxu1 %v5387_v1  ;;  %2474 = vmatprep.subr.bf16.mxu0 %v2098_v13 }
 0x218   : > { %2475 = vmatpush1.bf16.msra.mxu0 %v2097_v11 }
 0x219   : > { %v1902_v14 = vpop.f32.mrb[36].mxu1  ;;  %v1458_v15 = vpop.f32.mrb[36].mxu0 }
 0x21a   : > { %v1904_v16 = vpop.f32.mrb[37].mxu1  ;;  %v1460_v17 = vpop.f32.mrb[37].mxu0 }
 0x21b   : > { %v1905_v18 = vpop.f32.mrb[38].mxu1  ;;  %v1462_v20 = vpop.f32.mrb[38].mxu0 }
 0x21c   : > { %v2102_v19 = vpack.c.bf16 %v1905_v18, %v1902_v14  ;;  %v1907_v21 = vpop.f32.mrb[39].mxu1  ;;  %v2100_v22 = vpack.c.bf16 %v1462_v20, %v1458_v15  ;;  %v1464_v23 = vpop.f32.mrb[39].mxu0 }
 0x21d   : > { %v2101_v24 = vpack.c.bf16 %v1464_v23, %v1460_v17 }
 0x21e   : > { %2883 = vmatpush1.bf16.msra.mxu1 %v2102_v19 }
 0x21f   : > { %2884 = vmatprep.subr.bf16.mxu1 %v5387_v1  ;;  %2476 = vmatprep.subr.bf16.mxu0 %v2101_v24 }
 0x220   : > { %2477 = vmatpush1.bf16.msra.mxu0 %v2100_v22 }
 0x221   : > { %v1910_v25 = vpop.f32.mrb[40].mxu1  ;;  %v1468_v26 = vpop.f32.mrb[40].mxu0 }
 0x222   : > { %v1912_v27 = vpop.f32.mrb[41].mxu1  ;;  %v1470_v28 = vpop.f32.mrb[41].mxu0 }
 0x223   : > { %v1913_v29 = vpop.f32.mrb[42].mxu1  ;;  %v1472_v31 = vpop.f32.mrb[42].mxu0  ;;  %v5255_v27 = vld [vmem:[%s6426_s2] ss:$12 sps:$4 sm:$0xff]  }
 0x224   : > { %v2105_v30 = vpack.c.bf16 %v1913_v29, %v1910_v25  ;;  %v1915_v32 = vpop.f32.mrb[43].mxu1  ;;  %v2103_v33 = vpack.c.bf16 %v1472_v31, %v1468_v26  ;;  %v1474_v34 = vpop.f32.mrb[43].mxu0  ;;  %v5258_v29 = vld [vmem:[%s6426_s2 + $0x1c] ss:$12 sps:$4 sm:$0xff]  }
 0x225   : > { %v2104_v35 = vpack.c.bf16 %v1474_v34, %v1470_v28 }
 0x226   : > { %2885 = vmatpush1.bf16.msra.mxu1 %v2105_v30  ;;  %v5388_v30 = vmov 0.0  }
 0x227   : > { %2886 = vmatprep.subr.bf16.mxu1 %v5387_v1  ;;  %2478 = vmatprep.subr.bf16.mxu0 %v2104_v35 }
 0x228   : > { %2479 = vmatpush1.bf16.msra.mxu0 %v2103_v33 }
 0x229   : > { %v1918_v36 = vpop.f32.mrb[44].mxu1  ;;  %v1478_v37 = vpop.f32.mrb[44].mxu0 }
 0x22a   : > { %v1920_v38 = vpop.f32.mrb[45].mxu1  ;;  %v1480_v39 = vpop.f32.mrb[45].mxu0 }
 0x22b   : > { %v1921_v40 = vpop.f32.mrb[46].mxu1  ;;  %v1482_v42 = vpop.f32.mrb[46].mxu0 }
 0x22c   : > { %v2108_v41 = vpack.c.bf16 %v1921_v40, %v1918_v36  ;;  %v1923_v43 = vpop.f32.mrb[47].mxu1  ;;  %v2106_v44 = vpack.c.bf16 %v1482_v42, %v1478_v37  ;;  %v1484_v45 = vpop.f32.mrb[47].mxu0 }
 0x22d   : > { %v2107_v46 = vpack.c.bf16 %v1484_v45, %v1480_v39  ;;  %v5261_v43 = vld [vmem:[%s6426_s2 + $0x34] ss:$12 sps:$4 sm:$0xff]  }
 0x22e   : > { %2887 = vmatpush1.bf16.msra.mxu1 %v2108_v41  ;;  %v5260_v41 = vld [vmem:[%s6426_s2 + $0x18] ss:$12 sps:$4 sm:$0xff]  }
 0x22f   : > { %2888 = vmatprep.subr.bf16.mxu1 %v5387_v1  ;;  %2480 = vmatprep.subr.bf16.mxu0 %v2107_v46 }
 0x230   : > { %2481 = vmatpush1.bf16.msra.mxu0 %v2106_v44 }
 0x231   : > { %v1926_v47 = vpop.f32.mrb[48].mxu1  ;;  %v1488_v48 = vpop.f32.mrb[48].mxu0 }
 0x232   : > { %v1928_v49 = vpop.f32.mrb[49].mxu1  ;;  %v1490_v50 = vpop.f32.mrb[49].mxu0 }
 0x233   : > { %v1929_v51 = vpop.f32.mrb[50].mxu1  ;;  %v1492_v53 = vpop.f32.mrb[50].mxu0 }
 0x234   : > { %v2111_v52 = vpack.c.bf16 %v1929_v51, %v1926_v47  ;;  %v1931_v54 = vpop.f32.mrb[51].mxu1  ;;  %v2109_v55 = vpack.c.bf16 %v1492_v53, %v1488_v48  ;;  %v1494_v56 = vpop.f32.mrb[51].mxu0 }
 0x235   : > { %v2110_v57 = vpack.c.bf16 %v1494_v56, %v1490_v50  ;;  %v5263_v54 = vld [vmem:[%s6426_s2 + $0x30] ss:$12 sps:$4 sm:$0xff]   ;;  %v5264_v56 = vld [vmem:[%s6426_s2 + $0x4c] ss:$12 sps:$4 sm:$0xff]  }
 0x236   : > { %2889 = vmatpush1.bf16.msra.mxu1 %v2111_v52 }
 0x237   : > { %2890 = vmatprep.subr.bf16.mxu1 %v5387_v1  ;;  %2482 = vmatprep.subr.bf16.mxu0 %v2110_v57 }
 0x238   : > { %2483 = vmatpush1.bf16.msra.mxu0 %v2109_v55 }
 0x239   : > { %v1934_v58 = vpop.f32.mrb[52].mxu1  ;;  %v1498_v59 = vpop.f32.mrb[52].mxu0 }
 0x23a   : > { %v1936_v60 = vpop.f32.mrb[53].mxu1  ;;  %v1500_v61 = vpop.f32.mrb[53].mxu0 }
 0x23b   : > { %v1937_v62 = vpop.f32.mrb[54].mxu1  ;;  %v1502_v0 = vpop.f32.mrb[54].mxu0 }
 0x23c   : > { %v2114_v63 = vpack.c.bf16 %v1937_v62, %v1934_v58  ;;  %v1939_v2 = vpop.f32.mrb[55].mxu1  ;;  %v2112_v3 = vpack.c.bf16 %v1502_v0, %v1498_v59  ;;  %v1504_v4 = vpop.f32.mrb[55].mxu0 }
 0x23d   : > { %v2113_v5 = vpack.c.bf16 %v1504_v4, %v1500_v61  ;;  %v5266_v4 = vld [vmem:[%s6426_s2 + $0x48] ss:$12 sps:$4 sm:$0xff]  }
 0x23e   : > { %2891 = vmatpush1.bf16.msra.mxu1 %v2114_v63 }
 0x23f   : > { %2892 = vmatprep.subr.bf16.mxu1 %v5387_v1  ;;  %2484 = vmatprep.subr.bf16.mxu0 %v2113_v5 }
 0x240   : > { %2485 = vmatpush1.bf16.msra.mxu0 %v2112_v3 }
 0x241   : > { %v1942_v6 = vpop.f32.mrb[56].mxu1  ;;  %v1508_v7 = vpop.f32.mrb[56].mxu0 }
 0x242   : > { %v1944_v8 = vpop.f32.mrb[57].mxu1  ;;  %v1510_v9 = vpop.f32.mrb[57].mxu0 }
 0x243   : > { %v1945_v10 = vpop.f32.mrb[58].mxu1  ;;  %v1512_v12 = vpop.f32.mrb[58].mxu0 }
 0x244   : > { %v2117_v11 = vpack.c.bf16 %v1945_v10, %v1942_v6  ;;  %v1947_v13 = vpop.f32.mrb[59].mxu1  ;;  %v2115_v14 = vpack.c.bf16 %v1512_v12, %v1508_v7  ;;  %v1514_v15 = vpop.f32.mrb[59].mxu0  ;;  %v5267_v6 = vld [vmem:[%s6426_s2 + $0x64] ss:$12 sps:$4 sm:$0xff]  }
 0x245   : > { %v2116_v16 = vpack.c.bf16 %v1514_v15, %v1510_v9 }
 0x246   : > { %2893 = vmatpush1.bf16.msra.mxu1 %v2117_v11 }
 0x247   : > { %2894 = vmatprep.subr.bf16.mxu1 %v5387_v1  ;;  %2486 = vmatprep.subr.bf16.mxu0 %v2116_v16 }
 0x248   : > { %2487 = vmatpush1.bf16.msra.mxu0 %v2115_v14 }
 0x249   : > { %v1950_v17 = vpop.f32.mrb[60].mxu1  ;;  %v1518_v18 = vpop.f32.mrb[60].mxu0 }
 0x24a   : > { %v1952_v19 = vpop.f32.mrb[61].mxu1  ;;  %v1520_v20 = vpop.f32.mrb[61].mxu0 }
 0x24b   : > { %v1953_v21 = vpop.f32.mrb[62].mxu1  ;;  %v1522_v23 = vpop.f32.mrb[62].mxu0  ;;  %v5270_v19 = vld [vmem:[%s6426_s2 + $0x7c] ss:$12 sps:$4 sm:$0xff]  }
 0x24c   : > { %v2120_v22 = vpack.c.bf16 %v1953_v21, %v1950_v17  ;;  %v1955_v24 = vpop.f32.mrb[63].mxu1  ;;  %v2118_v25 = vpack.c.bf16 %v1522_v23, %v1518_v18  ;;  %v1524_v26 = vpop.f32.mrb[63].mxu0  ;;  %v5269_v17 = vld [vmem:[%s6426_s2 + $0x60] ss:$12 sps:$4 sm:$0xff]  }
 0x24d   : > { %v2119_v28 = vpack.c.bf16 %v1524_v26, %v1520_v20 }
 0x24e   : > { %2895 = vmatpush1.bf16.msra.mxu1 %v2120_v22 }
 0x24f   : > { %4394 = vmatprep.subr.bf16.mxu1 %v5388_v30  ;;  %2488 = vmatprep.subr.bf16.mxu0 %v2119_v28 }
 0x250   : > { %2489 = vmatpush1.bf16.msra.mxu0 %v2118_v25 }
 0x251   : > { %v1958_v31 = vpop.f32.mrb[64].mxu1  ;;  %2897 = vmatmul.mubr.bf16.vlgmr.msra.gmra.mrb[88].mxu1 %v5255_v27  ;;  %v1528_v32 = vpop.f32.mrb[64].mxu0 }
 0x252   : > { %v1960_v33 = vpop.f32.mrb[65].mxu1  ;;  %2904 = vmatprep.mubr.bf16.mxu1 %v5258_v29  ;;  %v1530_v34 = vpop.f32.mrb[65].mxu0 }
 0x253   : > { %v1961_v35 = vpop.f32.mrb[66].mxu1  ;;  %v1532_v37 = vpop.f32.mrb[66].mxu0  ;;  %2491 = vmatmul.mubr.bf16.vlgmr.msra.gmra.mrb[88].mxu0 %v5255_v27  ;;  %v5273_v33 = vld [vmem:[%s6426_s2 + $0x94] ss:$12 sps:$4 sm:$0xff]  }
 0x254   : > { %v2123_v36 = vpack.c.bf16 %v1961_v35, %v1958_v31  ;;  %v1963_v38 = vpop.f32.mrb[67].mxu1  ;;  %v2121_v39 = vpack.c.bf16 %v1532_v37, %v1528_v32  ;;  %v1534_v40 = vpop.f32.mrb[67].mxu0  ;;  %2500 = vmatprep.mubr.bf16.mxu0 %v5258_v29  ;;  %v5272_v31 = vld [vmem:[%s6426_s2 + $0x78] ss:$12 sps:$4 sm:$0xff]  }
 0x255   : > { %v2122_v42 = vpack.c.bf16 %v1534_v40, %v1530_v34  ;;  %v5389_v34 = vmov 65535  }
 0x256   : > { %4395 = vmatpush3.bf16.msra.mxu1 %v2123_v36  ;;  %v2447_v35 = vsel %vm1071_vm0, 4294967295, %v5389_v34  ;;  %vm3759_vm0 = vmand %vm3715_vm7, %vm3758_vm14 }
 0x257   : > { %4396 = vmatprep.subr.bf16.mxu1 %v5388_v30  ;;  %2661 = vmatprep.subr.bf16.mxu0 %v2122_v42  ;;  %vm3760_vm1 = vmor %vm3759_vm0, %vm3756_vm15 }
 0x258   : > { %2662 = vmatpush1.bf16.msra.mxu0 %v2121_v39 }
 0x259   : > { %v1966_v44 = vpop.f32.mrb[68].mxu1  ;;  %2905 = vmatmul.mubr.bf16.gmra.mrb[92].mxu1 %v5260_v41  ;;  %v1538_v45 = vpop.f32.mrb[68].mxu0 }
 0x25a   : > { %v1968_v46 = vpop.f32.mrb[69].mxu1  ;;  %2912 = vmatprep.mubr.bf16.mxu1 %v5261_v43  ;;  %v1540_v47 = vpop.f32.mrb[69].mxu0 }
 0x25b   : > { %v1969_v48 = vpop.f32.mrb[70].mxu1  ;;  %v1542_v50 = vpop.f32.mrb[70].mxu0  ;;  %2501 = vmatmul.mubr.bf16.gmra.mrb[92].mxu0 %v5260_v41  ;;  %v2448_v41 = vsel %vm2446_vm2, %v2447_v35, 0 }
 0x25c   : > { %v2126_v49 = vpack.c.bf16 %v1969_v48, %v1966_v44  ;;  %v1971_v51 = vpop.f32.mrb[71].mxu1  ;;  %v2124_v52 = vpack.c.bf16 %v1542_v50, %v1538_v45  ;;  %v1544_v53 = vpop.f32.mrb[71].mxu0  ;;  %2510 = vmatprep.mubr.bf16.mxu0 %v5261_v43  ;;  %v5276_v50 = vld [vmem:[%s6426_s2 + $0xac] ss:$12 sps:$4 sm:$0xff]  }
 0x25d   : > { %v2125_v55 = vpack.c.bf16 %v1544_v53, %v1540_v47  ;;  %v5275_v47 = vld [vmem:[%s6426_s2 + $0x90] ss:$12 sps:$4 sm:$0xff]   ;;  %v5278_v53 = vld [vmem:[%s6426_s2 + $0xa8] ss:$12 sps:$4 sm:$0xff]  }
 0x25e   : > { %4397 = vmatpush3.bf16.msra.mxu1 %v2126_v49 }
 0x25f   : > { %4398 = vmatprep.subr.bf16.mxu1 %v5388_v30  ;;  %2663 = vmatprep.subr.bf16.mxu0 %v2125_v55  ;;  %v5281_v55 = vld [vmem:[%s6426_s2 + $0xc0] ss:$12 sps:$4 sm:$0xff]  }
 0x260   : > { %2664 = vmatpush1.bf16.msra.mxu0 %v2124_v52 }
 0x261   : > { %v1974_v57 = vpop.f32.mrb[72].mxu1  ;;  %2913 = vmatmul.mubr.bf16.gmra.mrb[96].mxu1 %v5263_v54  ;;  %v1548_v58 = vpop.f32.mrb[72].mxu0 }
 0x262   : > { %v1976_v59 = vpop.f32.mrb[73].mxu1  ;;  %2920 = vmatprep.mubr.bf16.mxu1 %v5264_v56  ;;  %v1550_v60 = vpop.f32.mrb[73].mxu0 }
 0x263   : > { %v1977_v61 = vpop.f32.mrb[74].mxu1  ;;  %v1552_v63 = vpop.f32.mrb[74].mxu0  ;;  %2511 = vmatmul.mubr.bf16.gmra.mrb[96].mxu0 %v5263_v54  ;;  %v5279_v54 = vld [vmem:[%s6426_s2 + $0xc4] ss:$12 sps:$4 sm:$0xff]  }
 0x264   : > { %v2129_v62 = vpack.c.bf16 %v1977_v61, %v1974_v57  ;;  %v1979_v0 = vpop.f32.mrb[75].mxu1  ;;  %v2127_v2 = vpack.c.bf16 %v1552_v63, %v1548_v58  ;;  %v1554_v3 = vpop.f32.mrb[75].mxu0  ;;  %2520 = vmatprep.mubr.bf16.mxu0 %v5264_v56  ;;  %v5282_v56 = vld [vmem:[%s6426_s2 + $0xdc] ss:$12 sps:$4 sm:$0xff]   ;;  %v5284_v57 = vld [vmem:[%s6426_s2 + $0xd8] ss:$12 sps:$4 sm:$0xff]  }
 0x265   : > { %v2128_v5 = vpack.c.bf16 %v1554_v3, %v1550_v60  ;;  %v5285_v58 = vld [vmem:[%s6426_s2 + $0xf4] ss:$12 sps:$4 sm:$0xff]   ;;  %v5287_v59 = vld [vmem:[%s6426_s2 + $0xf0] ss:$12 sps:$4 sm:$0xff]   ;;  %v5288_v60 = vld [vmem:[%s6426_s2 + $0x10c] ss:$12 sps:$4 sm:$0xff]  }
 0x266   : > { %4399 = vmatpush3.bf16.msra.mxu1 %v2129_v62  ;;  %v5290_v61 = vld [vmem:[%s6426_s2 + $0x108] ss:$12 sps:$4 sm:$0xff]   ;;  %v5291_v62 = vld [vmem:[%s6426_s2 + $0x124] ss:$12 sps:$4 sm:$0xff]   ;;  %v5293_v63 = vld [vmem:[%s6426_s2 + $0x120] ss:$12 sps:$4 sm:$0xff]  }
 0x267   : > { %4400 = vmatprep.subr.bf16.mxu1 %v5388_v30  ;;  %2665 = vmatprep.subr.bf16.mxu0 %v2128_v5  ;;  %v5294_v0 = vld [vmem:[%s6426_s2 + $0x13c] ss:$12 sps:$4 sm:$0xff]   ;;  %v5297_v3 = vld [vmem:[%s6426_s2 + $0x154] ss:$12 sps:$4 sm:$0xff]   ;;  %v5300_v5 = vld [vmem:[%s6426_s2 + $0x16c] ss:$12 sps:$4 sm:$0xff]  }
 0x268   : > { %2666 = vmatpush1.bf16.msra.mxu0 %v2127_v2  ;;  %v5296_v2 = vld [vmem:[%s6426_s2 + $0x138] ss:$12 sps:$4 sm:$0xff]  }
 0x269   : > { %v1982_v7 = vpop.f32.mrb[76].mxu1  ;;  %2921 = vmatmul.mubr.bf16.gmra.mrb[100].mxu1 %v5266_v4  ;;  %v1558_v8 = vpop.f32.mrb[76].mxu0 }
 0x26a   : > { %v1984_v9 = vpop.f32.mrb[77].mxu1  ;;  %2928 = vmatprep.mubr.bf16.mxu1 %v5267_v6  ;;  %v1560_v10 = vpop.f32.mrb[77].mxu0 }
 0x26b   : > { %v1985_v11 = vpop.f32.mrb[78].mxu1  ;;  %v1562_v13 = vpop.f32.mrb[78].mxu0  ;;  %2521 = vmatmul.mubr.bf16.gmra.mrb[100].mxu0 %v5266_v4  ;;  %v5299_v4 = vld [vmem:[%s6426_s2 + $0x150] ss:$12 sps:$4 sm:$0xff]   ;;  %v5306_v9 = vld [vmem:[%s6426_s2 + $0x8] ss:$12 sps:$4 sm:$0xff]  }
 0x26c   : > { %v2132_v12 = vpack.c.bf16 %v1985_v11, %v1982_v7  ;;  %v1987_v14 = vpop.f32.mrb[79].mxu1  ;;  %v2130_v15 = vpack.c.bf16 %v1562_v13, %v1558_v8  ;;  %v1564_v16 = vpop.f32.mrb[79].mxu0  ;;  %2530 = vmatprep.mubr.bf16.mxu0 %v5267_v6  ;;  %v5302_v6 = vld [vmem:[%s6426_s2 + $0x168] ss:$12 sps:$4 sm:$0xff]   ;;  %v5308_v11 = vld [vmem:[%s6426_s2 + $0x38] ss:$12 sps:$4 sm:$0xff]  }
 0x26d   : > { %v2131_v18 = vpack.c.bf16 %v1564_v16, %v1560_v10  ;;  %v5303_v7 = vld [vmem:[%s6426_s2 + $0x184] ss:$12 sps:$4 sm:$0x7f]   ;;  %v5305_v8 = vld [vmem:[%s6426_s2 + $0x180] ss:$12 sps:$4 sm:$0x7f]  }
 0x26e   : > { %4401 = vmatpush3.bf16.msra.mxu1 %v2132_v12  ;;  %v5307_v10 = vld [vmem:[%s6426_s2 + $0x20] ss:$12 sps:$4 sm:$0xff]   ;;  %v5309_v12 = vld [vmem:[%s6426_s2 + $0x50] ss:$12 sps:$4 sm:$0xff]   ;;  %v5310_v13 = vld [vmem:[%s6426_s2 + $0x68] ss:$12 sps:$4 sm:$0xff]  }
 0x26f   : > { %4402 = vmatprep.subr.bf16.mxu1 %v5388_v30  ;;  %2667 = vmatprep.subr.bf16.mxu0 %v2131_v18  ;;  %v5311_v14 = vld [vmem:[%s6426_s2 + $0x80] ss:$12 sps:$4 sm:$0xff]   ;;  %v5313_v16 = vld [vmem:[%s6426_s2 + $0xb0] ss:$12 sps:$4 sm:$0xff]  }
 0x270   : > { %2668 = vmatpush1.bf16.msra.mxu0 %v2130_v15  ;;  %v5312_v15 = vld [vmem:[%s6426_s2 + $0x98] ss:$12 sps:$4 sm:$0xff]   ;;  %v5315_v18 = vld [vmem:[%s6426_s2 + $0xe0] ss:$12 sps:$4 sm:$0xff]  }
 0x271   : > { %v1990_v20 = vpop.f32.mrb[80].mxu1  ;;  %2929 = vmatmul.mubr.bf16.gmra.mrb[104].mxu1 %v5269_v17  ;;  %v1568_v21 = vpop.f32.mrb[80].mxu0 }
 0x272   : > { %v1992_v22 = vpop.f32.mrb[81].mxu1  ;;  %2936 = vmatprep.mubr.bf16.mxu1 %v5270_v19  ;;  %v1570_v23 = vpop.f32.mrb[81].mxu0 }
 0x273   : > { %v1993_v24 = vpop.f32.mrb[82].mxu1  ;;  %v1572_v26 = vpop.f32.mrb[82].mxu0  ;;  %2531 = vmatmul.mubr.bf16.gmra.mrb[104].mxu0 %v5269_v17  ;;  %v5314_v17 = vld [vmem:[%s6426_s2 + $0xc8] ss:$12 sps:$4 sm:$0xff]   ;;  %v5319_v22 = vld [vmem:[%s6426_s2 + $0x140] ss:$12 sps:$4 sm:$0xff]  }
 0x274   : > { %v2135_v25 = vpack.c.bf16 %v1993_v24, %v1990_v20  ;;  %v1995_v27 = vpop.f32.mrb[83].mxu1  ;;  %v2133_v28 = vpack.c.bf16 %v1572_v26, %v1568_v21  ;;  %v1574_v29 = vpop.f32.mrb[83].mxu0  ;;  %2540 = vmatprep.mubr.bf16.mxu0 %v5270_v19  ;;  %v5316_v19 = vld [vmem:[%s6426_s2 + $0xf8] ss:$12 sps:$4 sm:$0xff]   ;;  %v5317_v20 = vld [vmem:[%s6426_s2 + $0x110] ss:$12 sps:$4 sm:$0xff]  }
 0x275   : > { %v2134_v32 = vpack.c.bf16 %v1574_v29, %v1570_v23  ;;  %v5318_v21 = vld [vmem:[%s6426_s2 + $0x128] ss:$12 sps:$4 sm:$0xff]   ;;  %v5320_v23 = vld [vmem:[%s6426_s2 + $0x158] ss:$12 sps:$4 sm:$0xff]   ;;  %v5321_v24 = vld [vmem:[%s6426_s2 + $0x170] ss:$12 sps:$4 sm:$0xff]  }
 0x276   : > { %4403 = vmatpush3.bf16.msra.mxu1 %v2135_v25  ;;  %v5322_v25 = vld [vmem:[%s6426_s2 + $0x188] ss:$12 sps:$4 sm:$0x7f]  }
 0x277   : > { %4404 = vmatprep.subr.bf16.mxu1 %v5388_v30  ;;  %2669 = vmatprep.subr.bf16.mxu0 %v2134_v32 }
 0x278   : > { %2670 = vmatpush1.bf16.msra.mxu0 %v2133_v28 }
 0x279   : > { %v1998_v36 = vpop.f32.mrb[84].mxu1  ;;  %2937 = vmatmul.mubr.bf16.gmra.mrb[108].mxu1 %v5272_v31  ;;  %v1578_v37 = vpop.f32.mrb[84].mxu0 }
 0x27a   : > { %v2000_v38 = vpop.f32.mrb[85].mxu1  ;;  %2944 = vmatprep.mubr.bf16.mxu1 %v5273_v33  ;;  %v1580_v39 = vpop.f32.mrb[85].mxu0 }
 0x27b   : > { %v2001_v40 = vpop.f32.mrb[86].mxu1  ;;  %v1582_v43 = vpop.f32.mrb[86].mxu0  ;;  %2541 = vmatmul.mubr.bf16.gmra.mrb[108].mxu0 %v5272_v31 }
 0x27c   : > { %v2138_v42 = vpack.c.bf16 %v2001_v40, %v1998_v36  ;;  %v2003_v44 = vpop.f32.mrb[87].mxu1  ;;  %v2136_v45 = vpack.c.bf16 %v1582_v43, %v1578_v37  ;;  %v1584_v46 = vpop.f32.mrb[87].mxu0  ;;  %2550 = vmatprep.mubr.bf16.mxu0 %v5273_v33 }
 0x27d   : > { %v2137_v49 = vpack.c.bf16 %v1584_v46, %v1580_v39 }
 0x27e   : > { %v2456_v48 = vand.u32 %v2448_v41, %v2138_v42  ;;  %v2450_v52 = vand.u32 %v2448_v41, %v2136_v45 }
 0x27f   : > { %v2453_v51 = vand.u32 %v2448_v41, %v2137_v49 }
 0x280   : > { %4405 = vmatpush3.bf16.msra.mxu1 %v2456_v48 }
 0x281   : > { %2945 = vmatmul.mubr.bf16.gmra.mrb[112].mxu1 %v5275_v47  ;;  %2671 = vmatprep.subr.bf16.mxu0 %v2453_v51 }
 0x282   : > { %2952 = vmatprep.mubr.bf16.mxu1 %v5276_v50  ;;  %2672 = vmatpush1.bf16.msra.mxu0 %v2450_v52 }
 0x283   : > { %2551 = vmatmul.mubr.bf16.gmra.mrb[112].mxu0 %v5275_v47 }
 0x284   : > { %2560 = vmatprep.mubr.bf16.mxu0 %v5276_v50 }
 0x289   : > { %2953 = vmatmul.mubr.bf16.gmra.mrb[116].mxu1 %v5278_v53 }
 0x28a   : > { %2960 = vmatprep.mubr.bf16.mxu1 %v5279_v54 }
 0x28b   : > { %2561 = vmatmul.mubr.bf16.gmra.mrb[116].mxu0 %v5278_v53 }
 0x28c   : > { %2570 = vmatprep.mubr.bf16.mxu0 %v5279_v54 }
 0x291   : > { %2961 = vmatmul.mubr.bf16.gmra.mrb[120].mxu1 %v5281_v55 }
 0x292   : > { %2968 = vmatprep.mubr.bf16.mxu1 %v5282_v56 }
 0x293   : > { %2571 = vmatmul.mubr.bf16.gmra.mrb[120].mxu0 %v5281_v55 }
 0x294   : > { %2580 = vmatprep.mubr.bf16.mxu0 %v5282_v56 }
 0x299   : > { %2969 = vmatmul.mubr.bf16.gmra.mrb[124].mxu1 %v5284_v57 }
 0x29a   : > { %2976 = vmatprep.mubr.bf16.mxu1 %v5285_v58 }
 0x29b   : > { %2581 = vmatmul.mubr.bf16.gmra.mrb[124].mxu0 %v5284_v57 }
 0x29c   : > { %2590 = vmatprep.mubr.bf16.mxu0 %v5285_v58 }
 0x2a1   : > { %2977 = vmatmul.mubr.bf16.gmra.mrb[128].mxu1 %v5287_v59 }
 0x2a2   : > { %2984 = vmatprep.mubr.bf16.mxu1 %v5288_v60 }
 0x2a3   : > { %2591 = vmatmul.mubr.bf16.gmra.mrb[128].mxu0 %v5287_v59 }
 0x2a4   : > { %2600 = vmatprep.mubr.bf16.mxu0 %v5288_v60 }
 0x2a9   : > { %2985 = vmatmul.mubr.bf16.gmra.mrb[132].mxu1 %v5290_v61 }
 0x2aa   : > { %2992 = vmatprep.mubr.bf16.mxu1 %v5291_v62 }
 0x2ab   : > { %2601 = vmatmul.mubr.bf16.gmra.mrb[132].mxu0 %v5290_v61 }
 0x2ac   : > { %2610 = vmatprep.mubr.bf16.mxu0 %v5291_v62 }
 0x2b1   : > { %2993 = vmatmul.mubr.bf16.gmra.mrb[136].mxu1 %v5293_v63 }
 0x2b2   : > { %3000 = vmatprep.mubr.bf16.mxu1 %v5294_v0 }
 0x2b3   : > { %2611 = vmatmul.mubr.bf16.gmra.mrb[136].mxu0 %v5293_v63 }
 0x2b4   : > { %2620 = vmatprep.mubr.bf16.mxu0 %v5294_v0 }
 0x2b9   : > { %3001 = vmatmul.mubr.bf16.gmra.mrb[140].mxu1 %v5296_v2 }
 0x2ba   : > { %3008 = vmatprep.mubr.bf16.mxu1 %v5297_v3 }
 0x2bb   : > { %2621 = vmatmul.mubr.bf16.gmra.mrb[140].mxu0 %v5296_v2 }
 0x2bc   : > { %2630 = vmatprep.mubr.bf16.mxu0 %v5297_v3 }
 0x2c1   : > { %3009 = vmatmul.mubr.bf16.gmra.mrb[144].mxu1 %v5299_v4 }
 0x2c2   : > { %3016 = vmatprep.mubr.bf16.mxu1 %v5300_v5 }
 0x2c3   : > { %2631 = vmatmul.mubr.bf16.gmra.mrb[144].mxu0 %v5299_v4 }
 0x2c4   : > { %2640 = vmatprep.mubr.bf16.mxu0 %v5300_v5 }
 0x2c9   : > { %3017 = vmatmul.mubr.bf16.gmra.mrb[148].mxu1 %v5302_v6 }
 0x2ca   : > { %3024 = vmatprep.mubr.bf16.mxu1 %v5303_v7 }
 0x2cb   : > { %2641 = vmatmul.mubr.bf16.gmra.mrb[148].mxu0 %v5302_v6 }
 0x2cc   : > { %2650 = vmatprep.mubr.bf16.mxu0 %v5303_v7 }
 0x2d1   : > { %3025 = vmatmul.mubr.bf16.gmra.mrb[152].mxu1 %v5305_v8 }
 0x2d2   : > { %4406 = vmatprep.mubr.msk.bf16.mxu1 %vm5390_vm3, %v5388_v30 }
 0x2d3   : > { %2651 = vmatmul.mubr.bf16.gmra.mrb[152].mxu0 %v5305_v8 }
 0x2d4   : > { %2693 = vmatprep.mubr.bf16.mxu0 %v5387_v1 }
 0x2d9   : > { %4407 = vmatmul.mubr.msk.bf16.vlgmr.msra.gmra.mrb[88].mxu1 %vm2394_vm4, %v5306_v9 }
 0x2da   : > { %4410 = vmatprep.mubr.msk.bf16.mxu1 %vm5390_vm3, %v5388_v30 }
 0x2db   : > { %4028 = vmatmul.mubr.msk.bf16.vlgmr.msra.gmra.mrb[88].mxu0 %vm2394_vm4, %v5306_v9 }
 0x2dc   : > { %2703 = vmatprep.mubr.bf16.mxu0 %v5387_v1 }
 0x2e1   : > { %4411 = vmatmul.mubr.msk.bf16.gmra.mrb[92].mxu1 %vm2394_vm4, %v5307_v10 }
 0x2e2   : > { %4414 = vmatprep.mubr.msk.bf16.mxu1 %vm5390_vm3, %v5388_v30 }
 0x2e3   : > { %4029 = vmatmul.mubr.msk.bf16.gmra.mrb[92].mxu0 %vm2394_vm4, %v5307_v10 }
 0x2e4   : > { %2713 = vmatprep.mubr.bf16.mxu0 %v5387_v1 }
 0x2e9   : > { %4415 = vmatmul.mubr.msk.bf16.gmra.mrb[96].mxu1 %vm2394_vm4, %v5308_v11 }
 0x2ea   : > { %4418 = vmatprep.mubr.msk.bf16.mxu1 %vm5390_vm3, %v5388_v30 }
 0x2eb   : > { %4030 = vmatmul.mubr.msk.bf16.gmra.mrb[96].mxu0 %vm2394_vm4, %v5308_v11 }
 0x2ec   : > { %2723 = vmatprep.mubr.bf16.mxu0 %v5387_v1 }
 0x2f1   : > { %4419 = vmatmul.mubr.msk.bf16.gmra.mrb[100].mxu1 %vm2394_vm4, %v5309_v12 }
 0x2f2   : > { %4422 = vmatprep.mubr.msk.bf16.mxu1 %vm5390_vm3, %v5388_v30 }
 0x2f3   : > { %4031 = vmatmul.mubr.msk.bf16.gmra.mrb[100].mxu0 %vm2394_vm4, %v5309_v12 }
 0x2f4   : > { %2733 = vmatprep.mubr.bf16.mxu0 %v5387_v1 }
 0x2f9   : > { %4423 = vmatmul.mubr.msk.bf16.gmra.mrb[104].mxu1 %vm2394_vm4, %v5310_v13 }
 0x2fa   : > { %4426 = vmatprep.mubr.msk.bf16.mxu1 %vm5390_vm3, %v5388_v30 }
 0x2fb   : > { %4032 = vmatmul.mubr.msk.bf16.gmra.mrb[104].mxu0 %vm2394_vm4, %v5310_v13 }
 0x2fc   : > { %2743 = vmatprep.mubr.bf16.mxu0 %v5387_v1 }
 0x301   : > { %4427 = vmatmul.mubr.msk.bf16.gmra.mrb[108].mxu1 %vm2394_vm4, %v5311_v14 }
 0x302   : > { %4430 = vmatprep.mubr.msk.bf16.mxu1 %vm5390_vm3, %v5388_v30 }
 0x303   : > { %4033 = vmatmul.mubr.msk.bf16.gmra.mrb[108].mxu0 %vm2394_vm4, %v5311_v14 }
 0x304   : > { %2753 = vmatprep.mubr.bf16.mxu0 %v5387_v1 }
 0x309   : > { %4431 = vmatmul.mubr.msk.bf16.gmra.mrb[112].mxu1 %vm2394_vm4, %v5312_v15 }
 0x30a   : > { %4434 = vmatprep.mubr.msk.bf16.mxu1 %vm5390_vm3, %v5388_v30 }
 0x30b   : > { %4034 = vmatmul.mubr.msk.bf16.gmra.mrb[112].mxu0 %vm2394_vm4, %v5312_v15 }
 0x30c   : > { %2763 = vmatprep.mubr.bf16.mxu0 %v5387_v1 }
 0x311   : > { %4435 = vmatmul.mubr.msk.bf16.gmra.mrb[116].mxu1 %vm2394_vm4, %v5313_v16 }
 0x312   : > { %4438 = vmatprep.mubr.msk.bf16.mxu1 %vm5390_vm3, %v5388_v30 }
 0x313   : > { %4035 = vmatmul.mubr.msk.bf16.gmra.mrb[116].mxu0 %vm2394_vm4, %v5313_v16 }
 0x314   : > { %2773 = vmatprep.mubr.bf16.mxu0 %v5387_v1 }
 0x319   : > { %4439 = vmatmul.mubr.msk.bf16.gmra.mrb[120].mxu1 %vm2394_vm4, %v5314_v17 }
 0x31a   : > { %4442 = vmatprep.mubr.msk.bf16.mxu1 %vm5390_vm3, %v5388_v30 }
 0x31b   : > { %4036 = vmatmul.mubr.msk.bf16.gmra.mrb[120].mxu0 %vm2394_vm4, %v5314_v17 }
 0x31c   : > { %2783 = vmatprep.mubr.bf16.mxu0 %v5387_v1 }
 0x321   : > { %4443 = vmatmul.mubr.msk.bf16.gmra.mrb[124].mxu1 %vm2394_vm4, %v5315_v18 }
 0x322   : > { %4446 = vmatprep.mubr.msk.bf16.mxu1 %vm5390_vm3, %v5388_v30 }
 0x323   : > { %4037 = vmatmul.mubr.msk.bf16.gmra.mrb[124].mxu0 %vm2394_vm4, %v5315_v18 }
 0x324   : > { %2793 = vmatprep.mubr.bf16.mxu0 %v5387_v1 }
 0x329   : > { %4447 = vmatmul.mubr.msk.bf16.gmra.mrb[128].mxu1 %vm2394_vm4, %v5316_v19 }
 0x32a   : > { %4450 = vmatprep.mubr.msk.bf16.mxu1 %vm5390_vm3, %v5388_v30 }
 0x32b   : > { %4038 = vmatmul.mubr.msk.bf16.gmra.mrb[128].mxu0 %vm2394_vm4, %v5316_v19 }
 0x32c   : > { %2803 = vmatprep.mubr.bf16.mxu0 %v5387_v1 }
 0x331   : > { %4451 = vmatmul.mubr.msk.bf16.gmra.mrb[132].mxu1 %vm2394_vm4, %v5317_v20 }
 0x332   : > { %4454 = vmatprep.mubr.msk.bf16.mxu1 %vm5390_vm3, %v5388_v30 }
 0x333   : > { %4039 = vmatmul.mubr.msk.bf16.gmra.mrb[132].mxu0 %vm2394_vm4, %v5317_v20 }
 0x334   : > { %2813 = vmatprep.mubr.bf16.mxu0 %v5387_v1 }
 0x339   : > { %4455 = vmatmul.mubr.msk.bf16.gmra.mrb[136].mxu1 %vm2394_vm4, %v5318_v21 }
 0x33a   : > { %4458 = vmatprep.mubr.msk.bf16.mxu1 %vm5390_vm3, %v5388_v30 }
 0x33b   : > { %4040 = vmatmul.mubr.msk.bf16.gmra.mrb[136].mxu0 %vm2394_vm4, %v5318_v21 }
 0x33c   : > { %2823 = vmatprep.mubr.bf16.mxu0 %v5387_v1 }
 0x341   : > { %4459 = vmatmul.mubr.msk.bf16.gmra.mrb[140].mxu1 %vm2394_vm4, %v5319_v22 }
 0x342   : > { %4462 = vmatprep.mubr.msk.bf16.mxu1 %vm5390_vm3, %v5388_v30 }
 0x343   : > { %4041 = vmatmul.mubr.msk.bf16.gmra.mrb[140].mxu0 %vm2394_vm4, %v5319_v22 }
 0x344   : > { %2833 = vmatprep.mubr.bf16.mxu0 %v5387_v1 }
 0x349   : > { %4463 = vmatmul.mubr.msk.bf16.gmra.mrb[144].mxu1 %vm2394_vm4, %v5320_v23 }
 0x34a   : > { %4466 = vmatprep.mubr.msk.bf16.mxu1 %vm5390_vm3, %v5388_v30 }
 0x34b   : > { %4042 = vmatmul.mubr.msk.bf16.gmra.mrb[144].mxu0 %vm2394_vm4, %v5320_v23 }
 0x34c   : > { %2843 = vmatprep.mubr.bf16.mxu0 %v5387_v1 }
 0x351   : > { %4467 = vmatmul.mubr.msk.bf16.gmra.mrb[148].mxu1 %vm2394_vm4, %v5321_v24 }
 0x352   : > { %4470 = vmatprep.mubr.msk.bf16.mxu1 %vm5390_vm3, %v5388_v30 }
 0x353   : > { %4043 = vmatmul.mubr.msk.bf16.gmra.mrb[148].mxu0 %vm2394_vm4, %v5321_v24 }
 0x354   : > { %2853 = vmatprep.mubr.bf16.mxu0 %v5387_v1 }
 0x359   : > { %4471 = vmatmul.mubr.msk.bf16.gmra.mrb[152].mxu1 %vm2394_vm4, %v5322_v25 }
 0x35b   : > { %4044 = vmatmul.mubr.msk.bf16.gmra.mrb[152].mxu0 %vm2394_vm4, %v5322_v25 }
 0x3ac   : > { %v3067_v26 = vpop.f32.mrb[88].mxu1 }
 0x3ad   : > { %v4068_v27 = vmax.f32 %v3067_v26, 0.0  ;;  %v4408_v28 = vpop.f32.mrb[89].mxu1 }
 0x3ae   : > { %v3070_v29 = vpop.f32.mrb[90].mxu1  ;;  %v2695_v30 = vpop.f32.mrb[88].mxu0 }
 0x3af   : > { %v4069_v31 = vmin.f32 %v4068_v27, 255.0  ;;  %v4077_v32 = vmax.f32 %v3070_v29, 0.0  ;;  %v4409_v33 = vpop.f32.mrb[91].mxu1  ;;  %v4062_v34 = vmax.f32 %v2695_v30, 0.0  ;;  %v2697_v35 = vpop.f32.mrb[89].mxu0 }
 0x3b0   : > { %v4065_v37 = vmax.f32 %v2697_v35, 0.0  ;;  %v2699_v38 = vpop.f32.mrb[90].mxu0 }
 0x3b1   : > { %v4078_v36 = vmin.f32 %v4077_v32, 255.0  ;;  %v4063_v1 = vmin.f32 %v4062_v34, 255.0  ;;  %v4071_v39 = vmax.f32 %v2699_v38, 0.0  ;;  %v2701_v40 = vpop.f32.mrb[91].mxu0  ;;  %v4796_v41 = vcvt.f32.s32 %v4069_v31 }
 0x3b2   : > { %v4066_v42 = vmin.f32 %v4065_v37, 255.0  ;;  %v4074_v43 = vmax.f32 %v2701_v40, 0.0 }
 0x3b3   : > { %v4790_v44 = vcvt.f32.s32 %v4063_v1  ;;  %v4072_v45 = vmin.f32 %v4071_v39, 255.0  ;;  %v4805_v47 = vcvt.f32.s32 %v4078_v36  ;;  %v3611_v54 = vpack.c.b16 %v4796_v41, %v4796_v41 }
 0x3b4   : > { %v3075_v46 = vpop.f32.mrb[92].mxu1  ;;  %v4793_v48 = vcvt.f32.s32 %v4066_v42  ;;  %v4075_v49 = vmin.f32 %v4074_v43, 255.0 }
 0x3b5   : > { %v4086_v50 = vmax.f32 %v3075_v46, 0.0  ;;  %v4412_v51 = vpop.f32.mrb[93].mxu1  ;;  %v4799_v52 = vcvt.f32.s32 %v4072_v45  ;;  %v3614_v0 = vpack.c.b16 %v4805_v47, %v4805_v47 }
 0x3b6   : > { %v3078_v53 = vpop.f32.mrb[94].mxu1  ;;  %v3610_v55 = vpack.c.b16 %v4793_v48, %v4790_v44  ;;  %v4802_v56 = vcvt.f32.s32 %v4075_v49  ;;  %v2705_v58 = vpop.f32.mrb[92].mxu0 }
 0x3b7   : > { %v4095_v57 = vmax.f32 %v3078_v53, 0.0  ;;  %v4413_v59 = vpop.f32.mrb[95].mxu1  ;;  %v4087_v61 = vmin.f32 %v4086_v50, 255.0  ;;  %v4080_v62 = vmax.f32 %v2705_v58, 0.0  ;;  %v2707_v63 = vpop.f32.mrb[93].mxu0 }
 0x3b8   : > { %v3612_v2 = vpack.c.b8 %v3611_v54, %v3610_v55  ;;  %v3613_v3 = vpack.c.b16 %v4802_v56, %v4799_v52  ;;  %v2709_v5 = vpop.f32.mrb[94].mxu0  ;;  %v4083_v7 = vmax.f32 %v2707_v63, 0.0 }
 0x3b9   : > { %v4096_v4 = vmin.f32 %v4095_v57, 255.0  ;;  %v4081_v6 = vmin.f32 %v4080_v62, 255.0  ;;  %v4089_v8 = vmax.f32 %v2709_v5, 0.0  ;;  %v2711_v9 = vpop.f32.mrb[95].mxu0  ;;  %v4814_v12 = vcvt.f32.s32 %v4087_v61 }
 0x3ba   : > { %3717 = vst.msk [vmem:[%s6253_s20] sm:$0x3f] %vm6248_vm9, %v3612_v2  ;;  %v3615_v10 = vpack.c.b8 %v3614_v0, %v3613_v3  ;;  %v4092_v11 = vmax.f32 %v2711_v9, 0.0  ;;  %v4084_v14 = vmin.f32 %v4083_v7, 255.0 }
 0x3bb   : > { %v4808_v13 = vcvt.f32.s32 %v4081_v6  ;;  %v4090_v15 = vmin.f32 %v4089_v8, 255.0  ;;  %v4823_v17 = vcvt.f32.s32 %v4096_v4  ;;  %v3617_v29 = vpack.c.b16 %v4814_v12, %v4814_v12 }
 0x3bc   : > { %v3083_v16 = vpop.f32.mrb[96].mxu1  ;;  %3718 = vst.msk [vmem:[%s6253_s20 + $0x6] sm:$0x3f] %vm6248_vm9, %v3615_v10  ;;  %v4093_v18 = vmin.f32 %v4092_v11, 255.0  ;;  %v4811_v21 = vcvt.f32.s32 %v4084_v14 }
 0x3bd   : > { %v4104_v19 = vmax.f32 %v3083_v16, 0.0  ;;  %v4416_v20 = vpop.f32.mrb[97].mxu1  ;;  %v4817_v22 = vcvt.f32.s32 %v4090_v15  ;;  %v3620_v33 = vpack.c.b16 %v4823_v17, %v4823_v17 }
 0x3be   : > { %v3086_v23 = vpop.f32.mrb[98].mxu1  ;;  %v4820_v24 = vcvt.f32.s32 %v4093_v18  ;;  %v2715_v27 = vpop.f32.mrb[96].mxu0  ;;  %v3616_v31 = vpack.c.b16 %v4811_v21, %v4808_v13 }
 0x3bf   : > { %v4105_v25 = vmin.f32 %v4104_v19, 255.0  ;;  %v4113_v26 = vmax.f32 %v3086_v23, 0.0  ;;  %v4417_v28 = vpop.f32.mrb[99].mxu1  ;;  %v4098_v32 = vmax.f32 %v2715_v27, 0.0  ;;  %v2717_v30 = vpop.f32.mrb[97].mxu0 }
 0x3c0   : > { %v3619_v34 = vpack.c.b16 %v4820_v24, %v4817_v22  ;;  %v4101_v35 = vmax.f32 %v2717_v30, 0.0  ;;  %v2719_v36 = vpop.f32.mrb[98].mxu0  ;;  %v3618_v37 = vpack.c.b8 %v3617_v29, %v3616_v31 }
 0x3c1   : > { %v4114_v38 = vmin.f32 %v4113_v26, 255.0  ;;  %v4099_v1 = vmin.f32 %v4098_v32, 255.0  ;;  %v4107_v39 = vmax.f32 %v2719_v36, 0.0  ;;  %v2721_v40 = vpop.f32.mrb[99].mxu0  ;;  %v4832_v42 = vcvt.f32.s32 %v4105_v25 }
 0x3c2   : > { %v3621_v41 = vpack.c.b8 %v3620_v33, %v3619_v34  ;;  %v4102_v43 = vmin.f32 %v4101_v35, 255.0  ;;  %3719 = vst.msk [vmem:[%s6253_s20 + $0xc] sm:$0x3f] %vm6248_vm9, %v3618_v37  ;;  %v4110_v46 = vmax.f32 %v2721_v40, 0.0 }
 0x3c3   : > { %v4826_v44 = vcvt.f32.s32 %v4099_v1  ;;  %v4108_v45 = vmin.f32 %v4107_v39, 255.0  ;;  %v4841_v51 = vcvt.f32.s32 %v4114_v38  ;;  %v3623_v55 = vpack.c.b16 %v4832_v42, %v4832_v42 }
 0x3c4   : > { %v3091_v47 = vpop.f32.mrb[100].mxu1  ;;  %3720 = vst.msk [vmem:[%s6253_s20 + $0x12] sm:$0x3f] %vm6248_vm9, %v3621_v41  ;;  %v4829_v48 = vcvt.f32.s32 %v4102_v43  ;;  %v4111_v53 = vmin.f32 %v4110_v46, 255.0 }
 0x3c5   : > { %v4122_v49 = vmax.f32 %v3091_v47, 0.0  ;;  %v4420_v50 = vpop.f32.mrb[101].mxu1  ;;  %v4835_v52 = vcvt.f32.s32 %v4108_v45  ;;  %v3626_v6 = vpack.c.b16 %v4841_v51, %v4841_v51 }
 0x3c6   : > { %v3094_v54 = vpop.f32.mrb[102].mxu1  ;;  %v3622_v56 = vpack.c.b16 %v4829_v48, %v4826_v44  ;;  %v2725_v59 = vpop.f32.mrb[100].mxu0  ;;  %v4838_v62 = vcvt.f32.s32 %v4111_v53 }
 0x3c7   : > { %v4123_v57 = vmin.f32 %v4122_v49, 255.0  ;;  %v4131_v58 = vmax.f32 %v3094_v54, 0.0  ;;  %v4421_v61 = vpop.f32.mrb[103].mxu1  ;;  %v4116_v63 = vmax.f32 %v2725_v59, 0.0  ;;  %v2727_v0 = vpop.f32.mrb[101].mxu0 }
 0x3c8   : > { %v3624_v2 = vpack.c.b8 %v3623_v55, %v3622_v56  ;;  %v4119_v4 = vmax.f32 %v2727_v0, 0.0  ;;  %v2729_v5 = vpop.f32.mrb[102].mxu0  ;;  %v3625_v7 = vpack.c.b16 %v4838_v62, %v4835_v52 }
 0x3c9   : > { %v4132_v3 = vmin.f32 %v4131_v58, 255.0  ;;  %v4117_v8 = vmin.f32 %v4116_v63, 255.0  ;;  %v4125_v9 = vmax.f32 %v2729_v5, 0.0  ;;  %v2731_v10 = vpop.f32.mrb[103].mxu0  ;;  %v4850_v11 = vcvt.f32.s32 %v4123_v57 }
 0x3ca   : > { %3721 = vst.msk [vmem:[%s6253_s20 + $0x18] sm:$0x3f] %vm6248_vm9, %v3624_v2  ;;  %v4120_v12 = vmin.f32 %v4119_v4, 255.0  ;;  %v4128_v13 = vmax.f32 %v2731_v10, 0.0  ;;  %v3627_v14 = vpack.c.b8 %v3626_v6, %v3625_v7 }
 0x3cb   : > { %v4844_v15 = vcvt.f32.s32 %v4117_v8  ;;  %v4126_v16 = vmin.f32 %v4125_v9, 255.0  ;;  %v4859_v18 = vcvt.f32.s32 %v4132_v3  ;;  %v3629_v25 = vpack.c.b16 %v4850_v11, %v4850_v11 }
 0x3cc   : > { %v3099_v17 = vpop.f32.mrb[104].mxu1  ;;  %v4847_v19 = vcvt.f32.s32 %v4120_v12  ;;  %v4129_v20 = vmin.f32 %v4128_v13, 255.0  ;;  %3722 = vst.msk [vmem:[%s6253_s20 + $0x1e] sm:$0x3f] %vm6248_vm9, %v3627_v14 }
 0x3cd   : > { %v4140_v21 = vmax.f32 %v3099_v17, 0.0  ;;  %v4424_v22 = vpop.f32.mrb[105].mxu1  ;;  %v4853_v23 = vcvt.f32.s32 %v4126_v16  ;;  %v3632_v34 = vpack.c.b16 %v4859_v18, %v4859_v18 }
 0x3ce   : > { %v3102_v24 = vpop.f32.mrb[106].mxu1  ;;  %v3628_v26 = vpack.c.b16 %v4847_v19, %v4844_v15  ;;  %v4856_v27 = vcvt.f32.s32 %v4129_v20  ;;  %v2735_v29 = vpop.f32.mrb[104].mxu0 }
 0x3cf   : > { %v4149_v28 = vmax.f32 %v3102_v24, 0.0  ;;  %v4425_v31 = vpop.f32.mrb[107].mxu1  ;;  %v4141_v32 = vmin.f32 %v4140_v21, 255.0  ;;  %v4134_v30 = vmax.f32 %v2735_v29, 0.0  ;;  %v2737_v33 = vpop.f32.mrb[105].mxu0 }
 0x3d0   : > { %v3630_v35 = vpack.c.b8 %v3629_v25, %v3628_v26  ;;  %v3631_v36 = vpack.c.b16 %v4856_v27, %v4853_v23  ;;  %v2739_v38 = vpop.f32.mrb[106].mxu0  ;;  %v4137_v39 = vmax.f32 %v2737_v33, 0.0 }
 0x3d1   : > { %v4150_v37 = vmin.f32 %v4149_v28, 255.0  ;;  %v4135_v1 = vmin.f32 %v4134_v30, 255.0  ;;  %v4143_v40 = vmax.f32 %v2739_v38, 0.0  ;;  %v2741_v41 = vpop.f32.mrb[107].mxu0  ;;  %v4868_v44 = vcvt.f32.s32 %v4141_v32 }
 0x3d2   : > { %3723 = vst.msk [vmem:[%s6253_s20 + $0x24] sm:$0x3f] %vm6248_vm9, %v3630_v35  ;;  %v3633_v42 = vpack.c.b8 %v3632_v34, %v3631_v36  ;;  %v4146_v43 = vmax.f32 %v2741_v41, 0.0  ;;  %v4138_v46 = vmin.f32 %v4137_v39, 255.0 }
 0x3d3   : > { %v4862_v45 = vcvt.f32.s32 %v4135_v1  ;;  %v4144_v47 = vmin.f32 %v4143_v40, 255.0  ;;  %v4877_v49 = vcvt.f32.s32 %v4150_v37  ;;  %v3635_v62 = vpack.c.b16 %v4868_v44, %v4868_v44 }
 0x3d4   : > { %v3107_v48 = vpop.f32.mrb[108].mxu1  ;;  %3724 = vst.msk [vmem:[%s6253_s20 + $0x2a] sm:$0x3f] %vm6248_vm9, %v3633_v42  ;;  %v4147_v50 = vmin.f32 %v4146_v43, 255.0  ;;  %v4865_v53 = vcvt.f32.s32 %v4138_v46 }
 0x3d5   : > { %v4158_v51 = vmax.f32 %v3107_v48, 0.0  ;;  %v4428_v52 = vpop.f32.mrb[109].mxu1  ;;  %v4871_v54 = vcvt.f32.s32 %v4144_v47  ;;  %v3638_v3 = vpack.c.b16 %v4877_v49, %v4877_v49 }
 0x3d6   : > { %v3110_v55 = vpop.f32.mrb[110].mxu1  ;;  %v4874_v56 = vcvt.f32.s32 %v4147_v50  ;;  %v2745_v59 = vpop.f32.mrb[108].mxu0  ;;  %v3634_v63 = vpack.c.b16 %v4865_v53, %v4862_v45 }
 0x3d7   : > { %v4159_v57 = vmin.f32 %v4158_v51, 255.0  ;;  %v4167_v58 = vmax.f32 %v3110_v55, 0.0  ;;  %v4429_v61 = vpop.f32.mrb[111].mxu1  ;;  %v4152_v0 = vmax.f32 %v2745_v59, 0.0  ;;  %v2747_v2 = vpop.f32.mrb[109].mxu0 }
 0x3d8   : > { %v3637_v4 = vpack.c.b16 %v4874_v56, %v4871_v54  ;;  %v4155_v5 = vmax.f32 %v2747_v2, 0.0  ;;  %v2749_v6 = vpop.f32.mrb[110].mxu0  ;;  %v3636_v7 = vpack.c.b8 %v3635_v62, %v3634_v63 }
 0x3d9   : > { %v4168_v8 = vmin.f32 %v4167_v58, 255.0  ;;  %v4153_v9 = vmin.f32 %v4152_v0, 255.0  ;;  %v4161_v10 = vmax.f32 %v2749_v6, 0.0  ;;  %v2751_v11 = vpop.f32.mrb[111].mxu0  ;;  %v4886_v13 = vcvt.f32.s32 %v4159_v57 }
 0x3da   : > { %v3639_v12 = vpack.c.b8 %v3638_v3, %v3637_v4  ;;  %v4156_v14 = vmin.f32 %v4155_v5, 255.0  ;;  %3725 = vst.msk [vmem:[%s6253_s20 + $0x30] sm:$0x3f] %vm6248_vm9, %v3636_v7  ;;  %v4164_v17 = vmax.f32 %v2751_v11, 0.0 }
 0x3db   : > { %v4880_v15 = vcvt.f32.s32 %v4153_v9  ;;  %v4162_v16 = vmin.f32 %v4161_v10, 255.0  ;;  %v4895_v22 = vcvt.f32.s32 %v4168_v8  ;;  %v3641_v26 = vpack.c.b16 %v4886_v13, %v4886_v13 }
 0x3dc   : > { %v3115_v18 = vpop.f32.mrb[112].mxu1  ;;  %3726 = vst.msk [vmem:[%s6253_s20 + $0x36] sm:$0x3f] %vm6248_vm9, %v3639_v12  ;;  %v4883_v19 = vcvt.f32.s32 %v4156_v14  ;;  %v4165_v24 = vmin.f32 %v4164_v17, 255.0 }
 0x3dd   : > { %v4176_v20 = vmax.f32 %v3115_v18, 0.0  ;;  %v4432_v21 = vpop.f32.mrb[113].mxu1  ;;  %v4889_v23 = vcvt.f32.s32 %v4162_v16  ;;  %v3644_v1 = vpack.c.b16 %v4895_v22, %v4895_v22 }
 0x3de   : > { %v3118_v25 = vpop.f32.mrb[114].mxu1  ;;  %v3640_v27 = vpack.c.b16 %v4883_v19, %v4880_v15  ;;  %v2755_v31 = vpop.f32.mrb[112].mxu0  ;;  %v4892_v30 = vcvt.f32.s32 %v4165_v24 }
 0x3df   : > { %v4177_v28 = vmin.f32 %v4176_v20, 255.0  ;;  %v4185_v29 = vmax.f32 %v3118_v25, 0.0  ;;  %v4433_v32 = vpop.f32.mrb[115].mxu1  ;;  %v4170_v33 = vmax.f32 %v2755_v31, 0.0  ;;  %v2757_v34 = vpop.f32.mrb[113].mxu0 }
 0x3e0   : > { %v3642_v35 = vpack.c.b8 %v3641_v26, %v3640_v27  ;;  %v4173_v37 = vmax.f32 %v2757_v34, 0.0  ;;  %v2759_v38 = vpop.f32.mrb[114].mxu0  ;;  %v3643_v39 = vpack.c.b16 %v4892_v30, %v4889_v23 }
 0x3e1   : > { %v4186_v36 = vmin.f32 %v4185_v29, 255.0  ;;  %v4171_v40 = vmin.f32 %v4170_v33, 255.0  ;;  %v4179_v41 = vmax.f32 %v2759_v38, 0.0  ;;  %v2761_v42 = vpop.f32.mrb[115].mxu0  ;;  %v4904_v43 = vcvt.f32.s32 %v4177_v28 }
 0x3e2   : > { %3727 = vst.msk [vmem:[%s6253_s20 + $0x3c] sm:$0x3f] %vm6248_vm9, %v3642_v35  ;;  %v4174_v44 = vmin.f32 %v4173_v37, 255.0  ;;  %v4182_v45 = vmax.f32 %v2761_v42, 0.0  ;;  %v3645_v46 = vpack.c.b8 %v3644_v1, %v3643_v39 }
 0x3e3   : > { %v4898_v47 = vcvt.f32.s32 %v4171_v40  ;;  %v4180_v48 = vmin.f32 %v4179_v41, 255.0  ;;  %v4913_v50 = vcvt.f32.s32 %v4186_v36  ;;  %v3647_v57 = vpack.c.b16 %v4904_v43, %v4904_v43 }
 0x3e4   : > { %v3123_v49 = vpop.f32.mrb[116].mxu1  ;;  %v4901_v51 = vcvt.f32.s32 %v4174_v44  ;;  %v4183_v52 = vmin.f32 %v4182_v45, 255.0  ;;  %3728 = vst.msk [vmem:[%s6253_s20 + $0x42] sm:$0x3f] %vm6248_vm9, %v3645_v46 }
 0x3e5   : > { %v4194_v53 = vmax.f32 %v3123_v49, 0.0  ;;  %v4436_v54 = vpop.f32.mrb[117].mxu1  ;;  %v4907_v55 = vcvt.f32.s32 %v4180_v48  ;;  %v3650_v4 = vpack.c.b16 %v4913_v50, %v4913_v50 }
 0x3e6   : > { %v3126_v56 = vpop.f32.mrb[118].mxu1  ;;  %v3646_v58 = vpack.c.b16 %v4901_v51, %v4898_v47  ;;  %v4910_v59 = vcvt.f32.s32 %v4183_v52  ;;  %v2765_v62 = vpop.f32.mrb[116].mxu0 }
 0x3e7   : > { %v4203_v61 = vmax.f32 %v3126_v56, 0.0  ;;  %v4437_v63 = vpop.f32.mrb[119].mxu1  ;;  %v4195_v0 = vmin.f32 %v4194_v53, 255.0  ;;  %v4188_v2 = vmax.f32 %v2765_v62, 0.0  ;;  %v2767_v3 = vpop.f32.mrb[117].mxu0 }
 0x3e8   : > { %v3648_v5 = vpack.c.b8 %v3647_v57, %v3646_v58  ;;  %v3649_v6 = vpack.c.b16 %v4910_v59, %v4907_v55  ;;  %v2769_v8 = vpop.f32.mrb[118].mxu0  ;;  %v4191_v10 = vmax.f32 %v2767_v3, 0.0 }
 0x3e9   : > { %v4204_v7 = vmin.f32 %v4203_v61, 255.0  ;;  %v4189_v9 = vmin.f32 %v4188_v2, 255.0  ;;  %v4197_v11 = vmax.f32 %v2769_v8, 0.0  ;;  %v2771_v12 = vpop.f32.mrb[119].mxu0  ;;  %v4922_v15 = vcvt.f32.s32 %v4195_v0 }
 0x3ea   : > { %3729 = vst.msk [vmem:[%s6253_s20 + $0x48] sm:$0x3f] %vm6248_vm9, %v3648_v5  ;;  %v3651_v13 = vpack.c.b8 %v3650_v4, %v3649_v6  ;;  %v4200_v14 = vmax.f32 %v2771_v12, 0.0  ;;  %v4192_v17 = vmin.f32 %v4191_v10, 255.0 }
 0x3eb   : > { %v4916_v16 = vcvt.f32.s32 %v4189_v9  ;;  %v4198_v18 = vmin.f32 %v4197_v11, 255.0  ;;  %v4931_v20 = vcvt.f32.s32 %v4204_v7  ;;  %v3653_v30 = vpack.c.b16 %v4922_v15, %v4922_v15 }
 0x3ec   : > { %v3131_v19 = vpop.f32.mrb[120].mxu1  ;;  %3730 = vst.msk [vmem:[%s6253_s20 + $0x4e] sm:$0x3f] %vm6248_vm9, %v3651_v13  ;;  %v4201_v21 = vmin.f32 %v4200_v14, 255.0  ;;  %v4919_v24 = vcvt.f32.s32 %v4192_v17 }
 0x3ed   : > { %v4212_v22 = vmax.f32 %v3131_v19, 0.0  ;;  %v4440_v23 = vpop.f32.mrb[121].mxu1  ;;  %v4925_v25 = vcvt.f32.s32 %v4198_v18  ;;  %v3656_v36 = vpack.c.b16 %v4931_v20, %v4931_v20 }
 0x3ee   : > { %v3134_v26 = vpop.f32.mrb[122].mxu1  ;;  %v4928_v27 = vcvt.f32.s32 %v4201_v21  ;;  %v2775_v31 = vpop.f32.mrb[120].mxu0  ;;  %v3652_v33 = vpack.c.b16 %v4919_v24, %v4916_v16 }
 0x3ef   : > { %v4213_v28 = vmin.f32 %v4212_v22, 255.0  ;;  %v4221_v29 = vmax.f32 %v3134_v26, 0.0  ;;  %v4441_v32 = vpop.f32.mrb[123].mxu1  ;;  %v4206_v34 = vmax.f32 %v2775_v31, 0.0  ;;  %v2777_v35 = vpop.f32.mrb[121].mxu0 }
 0x3f0   : > { %v3655_v37 = vpack.c.b16 %v4928_v27, %v4925_v25  ;;  %v4209_v38 = vmax.f32 %v2777_v35, 0.0  ;;  %v2779_v1 = vpop.f32.mrb[122].mxu0  ;;  %v3654_v39 = vpack.c.b8 %v3653_v30, %v3652_v33 }
 0x3f1   : > { %v4222_v40 = vmin.f32 %v4221_v29, 255.0  ;;  %v4207_v41 = vmin.f32 %v4206_v34, 255.0  ;;  %v4215_v42 = vmax.f32 %v2779_v1, 0.0  ;;  %v2781_v43 = vpop.f32.mrb[123].mxu0  ;;  %v4940_v45 = vcvt.f32.s32 %v4213_v28 }
 0x3f2   : > { %v3657_v44 = vpack.c.b8 %v3656_v36, %v3655_v37  ;;  %v4210_v46 = vmin.f32 %v4209_v38, 255.0  ;;  %3731 = vst.msk [vmem:[%s6253_s20 + $0x54] sm:$0x3f] %vm6248_vm9, %v3654_v39  ;;  %v4218_v49 = vmax.f32 %v2781_v43, 0.0 }
 0x3f3   : > { %v4934_v47 = vcvt.f32.s32 %v4207_v41  ;;  %v4216_v48 = vmin.f32 %v4215_v42, 255.0  ;;  %v4949_v54 = vcvt.f32.s32 %v4222_v40  ;;  %v3659_v58 = vpack.c.b16 %v4940_v45, %v4940_v45 }
 0x3f4   : > { %v3139_v50 = vpop.f32.mrb[124].mxu1  ;;  %3732 = vst.msk [vmem:[%s6253_s20 + $0x5a] sm:$0x3f] %vm6248_vm9, %v3657_v44  ;;  %v4937_v51 = vcvt.f32.s32 %v4210_v46  ;;  %v4219_v56 = vmin.f32 %v4218_v49, 255.0 }
 0x3f5   : > { %v4230_v52 = vmax.f32 %v3139_v50, 0.0  ;;  %v4444_v53 = vpop.f32.mrb[125].mxu1  ;;  %v4943_v55 = vcvt.f32.s32 %v4216_v48  ;;  %v3662_v9 = vpack.c.b16 %v4949_v54, %v4949_v54 }
 0x3f6   : > { %v3142_v57 = vpop.f32.mrb[126].mxu1  ;;  %v3658_v59 = vpack.c.b16 %v4937_v51, %v4934_v47  ;;  %v2785_v63 = vpop.f32.mrb[124].mxu0  ;;  %v4946_v2 = vcvt.f32.s32 %v4219_v56 }
 0x3f7   : > { %v4231_v61 = vmin.f32 %v4230_v52, 255.0  ;;  %v4239_v62 = vmax.f32 %v3142_v57, 0.0  ;;  %v4445_v0 = vpop.f32.mrb[127].mxu1  ;;  %v4224_v3 = vmax.f32 %v2785_v63, 0.0  ;;  %v2787_v4 = vpop.f32.mrb[125].mxu0 }
 0x3f8   : > { %v3660_v5 = vpack.c.b8 %v3659_v58, %v3658_v59  ;;  %v4227_v7 = vmax.f32 %v2787_v4, 0.0  ;;  %v2789_v8 = vpop.f32.mrb[126].mxu0  ;;  %v3661_v10 = vpack.c.b16 %v4946_v2, %v4943_v55 }
 0x3f9   : > { %v4240_v6 = vmin.f32 %v4239_v62, 255.0  ;;  %v4225_v11 = vmin.f32 %v4224_v3, 255.0  ;;  %v4233_v12 = vmax.f32 %v2789_v8, 0.0  ;;  %v2791_v13 = vpop.f32.mrb[127].mxu0  ;;  %v4958_v14 = vcvt.f32.s32 %v4231_v61 }
 0x3fa   : > { %3733 = vst.msk [vmem:[%s6253_s20 + $0x60] sm:$0x3f] %vm6248_vm9, %v3660_v5  ;;  %v4228_v15 = vmin.f32 %v4227_v7, 255.0  ;;  %v4236_v16 = vmax.f32 %v2791_v13, 0.0  ;;  %v3663_v17 = vpack.c.b8 %v3662_v9, %v3661_v10 }
 0x3fb   : > { %v4952_v18 = vcvt.f32.s32 %v4225_v11  ;;  %v4234_v19 = vmin.f32 %v4233_v12, 255.0  ;;  %v4967_v21 = vcvt.f32.s32 %v4240_v6  ;;  %v3665_v28 = vpack.c.b16 %v4958_v14, %v4958_v14 }
 0x3fc   : > { %v3147_v20 = vpop.f32.mrb[128].mxu1  ;;  %v4955_v22 = vcvt.f32.s32 %v4228_v15  ;;  %v4237_v23 = vmin.f32 %v4236_v16, 255.0  ;;  %3734 = vst.msk [vmem:[%s6253_s20 + $0x66] sm:$0x3f] %vm6248_vm9, %v3663_v17 }
 0x3fd   : > { %v4248_v24 = vmax.f32 %v3147_v20, 0.0  ;;  %v4448_v25 = vpop.f32.mrb[129].mxu1  ;;  %v4961_v26 = vcvt.f32.s32 %v4234_v19  ;;  %v3668_v37 = vpack.c.b16 %v4967_v21, %v4967_v21 }
 0x3fe   : > { %v3150_v27 = vpop.f32.mrb[130].mxu1  ;;  %v3664_v29 = vpack.c.b16 %v4955_v22, %v4952_v18  ;;  %v4964_v31 = vcvt.f32.s32 %v4237_v23  ;;  %v2795_v30 = vpop.f32.mrb[128].mxu0 }
 0x3ff   : > { %v4257_v32 = vmax.f32 %v3150_v27, 0.0  ;;  %v4449_v33 = vpop.f32.mrb[131].mxu1  ;;  %v4249_v34 = vmin.f32 %v4248_v24, 255.0  ;;  %v4242_v35 = vmax.f32 %v2795_v30, 0.0  ;;  %v2797_v36 = vpop.f32.mrb[129].mxu0 }
 0x400   : > { %v3666_v38 = vpack.c.b8 %v3665_v28, %v3664_v29  ;;  %v3667_v1 = vpack.c.b16 %v4964_v31, %v4961_v26  ;;  %v2799_v40 = vpop.f32.mrb[130].mxu0  ;;  %v4245_v42 = vmax.f32 %v2797_v36, 0.0 }
 0x401   : > { %v4258_v39 = vmin.f32 %v4257_v32, 255.0  ;;  %v4243_v41 = vmin.f32 %v4242_v35, 255.0  ;;  %v4251_v43 = vmax.f32 %v2799_v40, 0.0  ;;  %v2801_v44 = vpop.f32.mrb[131].mxu0  ;;  %v4976_v47 = vcvt.f32.s32 %v4249_v34 }
 0x402   : > { %3735 = vst.msk [vmem:[%s6253_s20 + $0x6c] sm:$0x3f] %vm6248_vm9, %v3666_v38  ;;  %v3669_v45 = vpack.c.b8 %v3668_v37, %v3667_v1  ;;  %v4254_v46 = vmax.f32 %v2801_v44, 0.0  ;;  %v4246_v49 = vmin.f32 %v4245_v42, 255.0 }
 0x403   : > { %v4970_v48 = vcvt.f32.s32 %v4243_v41  ;;  %v4252_v50 = vmin.f32 %v4251_v43, 255.0  ;;  %v4985_v52 = vcvt.f32.s32 %v4258_v39  ;;  %v3671_v2 = vpack.c.b16 %v4976_v47, %v4976_v47 }
 0x404   : > { %v3155_v51 = vpop.f32.mrb[132].mxu1  ;;  %3736 = vst.msk [vmem:[%s6253_s20 + $0x72] sm:$0x3f] %vm6248_vm9, %v3669_v45  ;;  %v4255_v53 = vmin.f32 %v4254_v46, 255.0  ;;  %v4973_v56 = vcvt.f32.s32 %v4246_v49 }
 0x405   : > { %v4266_v54 = vmax.f32 %v3155_v51, 0.0  ;;  %v4452_v55 = vpop.f32.mrb[133].mxu1  ;;  %v4979_v57 = vcvt.f32.s32 %v4252_v50  ;;  %v3674_v6 = vpack.c.b16 %v4985_v52, %v4985_v52 }
 0x406   : > { %v3158_v58 = vpop.f32.mrb[134].mxu1  ;;  %v4982_v59 = vcvt.f32.s32 %v4255_v53  ;;  %v2805_v63 = vpop.f32.mrb[132].mxu0  ;;  %v3670_v3 = vpack.c.b16 %v4973_v56, %v4970_v48 }
 0x407   : > { %v4267_v61 = vmin.f32 %v4266_v54, 255.0  ;;  %v4275_v62 = vmax.f32 %v3158_v58, 0.0  ;;  %v4453_v0 = vpop.f32.mrb[135].mxu1  ;;  %v4260_v4 = vmax.f32 %v2805_v63, 0.0  ;;  %v2807_v5 = vpop.f32.mrb[133].mxu0 }
 0x408   : > { %v3673_v7 = vpack.c.b16 %v4982_v59, %v4979_v57  ;;  %v4263_v8 = vmax.f32 %v2807_v5, 0.0  ;;  %v2809_v9 = vpop.f32.mrb[134].mxu0  ;;  %v3672_v10 = vpack.c.b8 %v3671_v2, %v3670_v3 }
 0x409   : > { %v4276_v11 = vmin.f32 %v4275_v62, 255.0  ;;  %v4261_v12 = vmin.f32 %v4260_v4, 255.0  ;;  %v4269_v13 = vmax.f32 %v2809_v9, 0.0  ;;  %v2811_v14 = vpop.f32.mrb[135].mxu0  ;;  %v4994_v16 = vcvt.f32.s32 %v4267_v61 }
 0x40a   : > { %v3675_v15 = vpack.c.b8 %v3674_v6, %v3673_v7  ;;  %v4264_v17 = vmin.f32 %v4263_v8, 255.0  ;;  %3737 = vst.msk [vmem:[%s6253_s20 + $0x78] sm:$0x3f] %vm6248_vm9, %v3672_v10  ;;  %v4272_v20 = vmax.f32 %v2811_v14, 0.0 }
 0x40b   : > { %v4988_v18 = vcvt.f32.s32 %v4261_v12  ;;  %v4270_v19 = vmin.f32 %v4269_v13, 255.0  ;;  %v5003_v25 = vcvt.f32.s32 %v4276_v11  ;;  %v3677_v29 = vpack.c.b16 %v4994_v16, %v4994_v16 }
 0x40c   : > { %v3163_v21 = vpop.f32.mrb[136].mxu1  ;;  %3738 = vst.msk [vmem:[%s6253_s20 + $0x7e] sm:$0x3f] %vm6248_vm9, %v3675_v15  ;;  %v4991_v22 = vcvt.f32.s32 %v4264_v17  ;;  %v4273_v27 = vmin.f32 %v4272_v20, 255.0 }
 0x40d   : > { %v4284_v23 = vmax.f32 %v3163_v21, 0.0  ;;  %v4456_v24 = vpop.f32.mrb[137].mxu1  ;;  %v4997_v26 = vcvt.f32.s32 %v4270_v19  ;;  %v3680_v41 = vpack.c.b16 %v5003_v25, %v5003_v25 }
 0x40e   : > { %v3166_v28 = vpop.f32.mrb[138].mxu1  ;;  %v3676_v31 = vpack.c.b16 %v4991_v22, %v4988_v18  ;;  %v2815_v33 = vpop.f32.mrb[136].mxu0  ;;  %v5000_v35 = vcvt.f32.s32 %v4273_v27 }
 0x40f   : > { %v4285_v32 = vmin.f32 %v4284_v23, 255.0  ;;  %v4293_v30 = vmax.f32 %v3166_v28, 0.0  ;;  %v4457_v34 = vpop.f32.mrb[139].mxu1  ;;  %v4278_v36 = vmax.f32 %v2815_v33, 0.0  ;;  %v2817_v37 = vpop.f32.mrb[137].mxu0 }
 0x410   : > { %v3678_v38 = vpack.c.b8 %v3677_v29, %v3676_v31  ;;  %v4281_v39 = vmax.f32 %v2817_v37, 0.0  ;;  %v2819_v40 = vpop.f32.mrb[138].mxu0  ;;  %v3679_v42 = vpack.c.b16 %v5000_v35, %v4997_v26 }
 0x411   : > { %v4294_v1 = vmin.f32 %v4293_v30, 255.0  ;;  %v4279_v43 = vmin.f32 %v4278_v36, 255.0  ;;  %v4287_v44 = vmax.f32 %v2819_v40, 0.0  ;;  %v2821_v45 = vpop.f32.mrb[139].mxu0  ;;  %v5012_v46 = vcvt.f32.s32 %v4285_v32 }
 0x412   : > { %3739 = vst.msk [vmem:[%s6253_s20 + $0x84] sm:$0x3f] %vm6248_vm9, %v3678_v38  ;;  %v4282_v47 = vmin.f32 %v4281_v39, 255.0  ;;  %v4290_v48 = vmax.f32 %v2821_v45, 0.0  ;;  %v3681_v49 = vpack.c.b8 %v3680_v41, %v3679_v42 }
 0x413   : > { %v5006_v50 = vcvt.f32.s32 %v4279_v43  ;;  %v4288_v51 = vmin.f32 %v4287_v44, 255.0  ;;  %v5021_v53 = vcvt.f32.s32 %v4294_v1  ;;  %v3683_v61 = vpack.c.b16 %v5012_v46, %v5012_v46 }
 0x414   : > { %v3171_v52 = vpop.f32.mrb[140].mxu1  ;;  %v5009_v54 = vcvt.f32.s32 %v4282_v47  ;;  %v4291_v55 = vmin.f32 %v4290_v48, 255.0  ;;  %3740 = vst.msk [vmem:[%s6253_s20 + $0x8a] sm:$0x3f] %vm6248_vm9, %v3681_v49 }
 0x415   : > { %v4302_v56 = vmax.f32 %v3171_v52, 0.0  ;;  %v4460_v57 = vpop.f32.mrb[141].mxu1  ;;  %v5015_v58 = vcvt.f32.s32 %v4288_v51  ;;  %v3686_v7 = vpack.c.b16 %v5021_v53, %v5021_v53 }
 0x416   : > { %v3174_v59 = vpop.f32.mrb[142].mxu1  ;;  %v3682_v62 = vpack.c.b16 %v5009_v54, %v5006_v50  ;;  %v5018_v63 = vcvt.f32.s32 %v4291_v55  ;;  %v2825_v2 = vpop.f32.mrb[140].mxu0 }
 0x417   : > { %v4311_v0 = vmax.f32 %v3174_v59, 0.0  ;;  %v4461_v3 = vpop.f32.mrb[143].mxu1  ;;  %v4303_v4 = vmin.f32 %v4302_v56, 255.0  ;;  %v4296_v5 = vmax.f32 %v2825_v2, 0.0  ;;  %v2827_v6 = vpop.f32.mrb[141].mxu0 }
 0x418   : > { %v3684_v8 = vpack.c.b8 %v3683_v61, %v3682_v62  ;;  %v3685_v9 = vpack.c.b16 %v5018_v63, %v5015_v58  ;;  %v2829_v11 = vpop.f32.mrb[142].mxu0  ;;  %v4299_v13 = vmax.f32 %v2827_v6, 0.0 }
 0x419   : > { %v4312_v10 = vmin.f32 %v4311_v0, 255.0  ;;  %v4297_v12 = vmin.f32 %v4296_v5, 255.0  ;;  %v4305_v14 = vmax.f32 %v2829_v11, 0.0  ;;  %v2831_v15 = vpop.f32.mrb[143].mxu0  ;;  %v5030_v18 = vcvt.f32.s32 %v4303_v4 }
 0x41a   : > { %3741 = vst.msk [vmem:[%s6253_s20 + $0x90] sm:$0x3f] %vm6248_vm9, %v3684_v8  ;;  %v3687_v16 = vpack.c.b8 %v3686_v7, %v3685_v9  ;;  %v4308_v17 = vmax.f32 %v2831_v15, 0.0  ;;  %v4300_v20 = vmin.f32 %v4299_v13, 255.0 }
 0x41b   : > { %v5024_v19 = vcvt.f32.s32 %v4297_v12  ;;  %v4306_v21 = vmin.f32 %v4305_v14, 255.0  ;;  %v5039_v23 = vcvt.f32.s32 %v4312_v10  ;;  %v3689_v35 = vpack.c.b16 %v5030_v18, %v5030_v18 }
 0x41c   : > { %v3179_v22 = vpop.f32.mrb[144].mxu1  ;;  %3742 = vst.msk [vmem:[%s6253_s20 + $0x96] sm:$0x3f] %vm6248_vm9, %v3687_v16  ;;  %v4309_v24 = vmin.f32 %v4308_v17, 255.0  ;;  %v5027_v27 = vcvt.f32.s32 %v4300_v20 }
 0x41d   : > { %v4320_v25 = vmax.f32 %v3179_v22, 0.0  ;;  %v4464_v26 = vpop.f32.mrb[145].mxu1  ;;  %v5033_v28 = vcvt.f32.s32 %v4306_v21  ;;  %v3692_v1 = vpack.c.b16 %v5039_v23, %v5039_v23 }
 0x41e   : > { %v3182_v29 = vpop.f32.mrb[146].mxu1  ;;  %v5036_v31 = vcvt.f32.s32 %v4309_v24  ;;  %v2835_v33 = vpop.f32.mrb[144].mxu0  ;;  %v3688_v36 = vpack.c.b16 %v5027_v27, %v5024_v19 }
 0x41f   : > { %v4321_v32 = vmin.f32 %v4320_v25, 255.0  ;;  %v4329_v30 = vmax.f32 %v3182_v29, 0.0  ;;  %v4465_v34 = vpop.f32.mrb[147].mxu1  ;;  %v4314_v37 = vmax.f32 %v2835_v33, 0.0  ;;  %v2837_v38 = vpop.f32.mrb[145].mxu0 }
 0x420   : > { %v3691_v39 = vpack.c.b16 %v5036_v31, %v5033_v28  ;;  %v4317_v40 = vmax.f32 %v2837_v38, 0.0  ;;  %v2839_v41 = vpop.f32.mrb[146].mxu0  ;;  %v3690_v42 = vpack.c.b8 %v3689_v35, %v3688_v36 }
 0x421   : > { %v4330_v43 = vmin.f32 %v4329_v30, 255.0  ;;  %v4315_v44 = vmin.f32 %v4314_v37, 255.0  ;;  %v4323_v45 = vmax.f32 %v2839_v41, 0.0  ;;  %v2841_v46 = vpop.f32.mrb[147].mxu0  ;;  %v5048_v48 = vcvt.f32.s32 %v4321_v32 }
 0x422   : > { %v3693_v47 = vpack.c.b8 %v3692_v1, %v3691_v39  ;;  %v4318_v49 = vmin.f32 %v4317_v40, 255.0  ;;  %3743 = vst.msk [vmem:[%s6253_s20 + $0x9c] sm:$0x3f] %vm6248_vm9, %v3690_v42  ;;  %v4326_v52 = vmax.f32 %v2841_v46, 0.0 }
 0x423   : > { %v5042_v50 = vcvt.f32.s32 %v4315_v44  ;;  %v4324_v51 = vmin.f32 %v4323_v45, 255.0  ;;  %v5057_v57 = vcvt.f32.s32 %v4330_v43  ;;  %v3695_v62 = vpack.c.b16 %v5048_v48, %v5048_v48 }
 0x424   : > { %v3187_v53 = vpop.f32.mrb[148].mxu1  ;;  %3744 = vst.msk [vmem:[%s6253_s20 + $0xa2] sm:$0x3f] %vm6248_vm9, %v3693_v47  ;;  %v5045_v54 = vcvt.f32.s32 %v4318_v49  ;;  %v4327_v59 = vmin.f32 %v4326_v52, 255.0 }
 0x425   : > { %v4338_v55 = vmax.f32 %v3187_v53, 0.0  ;;  %v4468_v56 = vpop.f32.mrb[149].mxu1  ;;  %v5051_v58 = vcvt.f32.s32 %v4324_v51  ;;  %v3698_v12 = vpack.c.b16 %v5057_v57, %v5057_v57 }
 0x426   : > { %v3190_v61 = vpop.f32.mrb[150].mxu1  ;;  %v3694_v63 = vpack.c.b16 %v5045_v54, %v5042_v50  ;;  %v2845_v3 = vpop.f32.mrb[148].mxu0  ;;  %v5054_v5 = vcvt.f32.s32 %v4327_v59 }
 0x427   : > { %v4339_v0 = vmin.f32 %v4338_v55, 255.0  ;;  %v4347_v2 = vmax.f32 %v3190_v61, 0.0  ;;  %v4469_v4 = vpop.f32.mrb[151].mxu1  ;;  %v4332_v6 = vmax.f32 %v2845_v3, 0.0  ;;  %v2847_v7 = vpop.f32.mrb[149].mxu0 }
 0x428   : > { %v3696_v8 = vpack.c.b8 %v3695_v62, %v3694_v63  ;;  %v4335_v10 = vmax.f32 %v2847_v7, 0.0  ;;  %v2849_v11 = vpop.f32.mrb[150].mxu0  ;;  %v3697_v13 = vpack.c.b16 %v5054_v5, %v5051_v58  ;;  %v3761_v4 = vld [vmem:[%s6253_s20 + $0xc6] sm:$0x3f] }
 0x429   : > { %v4348_v9 = vmin.f32 %v4347_v2, 255.0  ;;  %v4333_v14 = vmin.f32 %v4332_v6, 255.0  ;;  %v4341_v15 = vmax.f32 %v2849_v11, 0.0  ;;  %v2851_v16 = vpop.f32.mrb[151].mxu0  ;;  %v5066_v17 = vcvt.f32.s32 %v4339_v0 }
 0x42a   : > { %3745 = vst.msk [vmem:[%s6253_s20 + $0xa8] sm:$0x3f] %vm6248_vm9, %v3696_v8  ;;  %v4336_v18 = vmin.f32 %v4335_v10, 255.0  ;;  %v4344_v19 = vmax.f32 %v2851_v16, 0.0  ;;  %v3699_v20 = vpack.c.b8 %v3698_v12, %v3697_v13 }
 0x42b   : > { %v5060_v21 = vcvt.f32.s32 %v4333_v14  ;;  %v4342_v22 = vmin.f32 %v4341_v15, 255.0  ;;  %v5075_v24 = vcvt.f32.s32 %v4348_v9  ;;  %v3701_v32 = vpack.c.b16 %v5066_v17, %v5066_v17 }
 0x42c   : > { %v3195_v23 = vpop.f32.mrb[152].mxu1  ;;  %v5063_v25 = vcvt.f32.s32 %v4336_v18  ;;  %v4345_v26 = vmin.f32 %v4344_v19, 255.0  ;;  %3746 = vst.msk [vmem:[%s6253_s20 + $0xae] sm:$0x3f] %vm6248_vm9, %v3699_v20 }
 0x42d   : > { %v4356_v27 = vmax.f32 %v3195_v23, 0.0  ;;  %v4472_v28 = vpop.f32.mrb[153].mxu1  ;;  %v5069_v29 = vcvt.f32.s32 %v4342_v22  ;;  %v3704_v39 = vpack.c.b16 %v5075_v24, %v5075_v24 }
 0x42e   : > { %v3198_v31 = vpop.f32.mrb[154].mxu1  ;;  %v3700_v30 = vpack.c.b16 %v5063_v25, %v5060_v21  ;;  %v5072_v33 = vcvt.f32.s32 %v4345_v26  ;;  %v2855_v35 = vpop.f32.mrb[152].mxu0 }
 0x42f   : > { %v4365_v34 = vmax.f32 %v3198_v31, 0.0  ;;  %v4473_v36 = vpop.f32.mrb[155].mxu1  ;;  %v4357_v37 = vmin.f32 %v4356_v27, 255.0  ;;  %v4350_v38 = vmax.f32 %v2855_v35, 0.0  ;;  %v2857_v1 = vpop.f32.mrb[153].mxu0 }
 0x430   : > { %v3702_v40 = vpack.c.b8 %v3701_v32, %v3700_v30  ;;  %v3703_v41 = vpack.c.b16 %v5072_v33, %v5069_v29  ;;  %v2859_v43 = vpop.f32.mrb[154].mxu0  ;;  %v4353_v45 = vmax.f32 %v2857_v1, 0.0 }
 0x431   : > { %v4366_v42 = vmin.f32 %v4365_v34, 255.0  ;;  %v4351_v44 = vmin.f32 %v4350_v38, 255.0  ;;  %v4359_v46 = vmax.f32 %v2859_v43, 0.0  ;;  %v2861_v47 = vpop.f32.mrb[155].mxu0  ;;  %v5084_v52 = vcvt.f32.s32 %v4357_v37 }
 0x432   : > { %3747 = vst.msk [vmem:[%s6253_s20 + $0xb4] sm:$0x3f] %vm6248_vm9, %v3702_v40  ;;  %v3705_v49 = vpack.c.b8 %v3704_v39, %v3703_v41  ;;  %v4362_v50 = vmax.f32 %v2861_v47, 0.0  ;;  %v4354_v54 = vmin.f32 %v4353_v45, 255.0 }
 0x433   : > { %v5078_v53 = vcvt.f32.s32 %v4351_v44  ;;  %v4360_v55 = vmin.f32 %v4359_v46, 255.0  ;;  %v5093_v56 = vcvt.f32.s32 %v4366_v42  ;;  %v3707_v62 = vpack.c.b16 %v5084_v52, %v5084_v52 }
 0x434   : > { %3748 = vst.msk [vmem:[%s6253_s20 + $0xba] sm:$0x3f] %vm6248_vm9, %v3705_v49  ;;  %v4363_v57 = vmin.f32 %v4362_v50, 255.0  ;;  %v5081_v58 = vcvt.f32.s32 %v4354_v54 }
 0x435   : > { %v5087_v59 = vcvt.f32.s32 %v4360_v55  ;;  %v3710_v0 = vpack.c.b16 %v5093_v56, %v5093_v56 }
 0x436   : > { %v5090_v61 = vcvt.f32.s32 %v4363_v57  ;;  %v3706_v63 = vpack.c.b16 %v5081_v58, %v5078_v53 }
 0x438   : > { %v3709_v2 = vpack.c.b16 %v5090_v61, %v5087_v59  ;;  %v3708_v3 = vpack.c.b8 %v3707_v62, %v3706_v63 }
 0x43a   : > { %v3711_v5 = vpack.c.b8 %v3710_v0, %v3709_v2  ;;  %3749 = vst.msk [vmem:[%s6253_s20 + $0xc0] sm:$0x3f] %vm6248_vm9, %v3708_v3 }
 0x43c   : > { %v3762_v6 = vsel %vm3760_vm1, %v3711_v5, %v3761_v4 }
 0x43d   : > { %3763 = vst [vmem:[%s6253_s20 + $0xc6] sm:$0x3f] %v3762_v6 }
 0x43e   : > { %5336 = shalt.err (!%p5333_p3)
}
 0x43f   : > { %s5337_s6 = scalar_lea.hbm %s6373_s28, 3264  ;;  %s5341_s9 = scalar_lea.hbm %s6427_s3, 9792 }
 0x440   : > { %p5338_p4 = scmp.ne.s32.totalorder %s6373_s28, %s5337_s6  ;;  %p5342_p9 = scmp.lt.u32.totalorder %s6373_s28, %s6427_s3 }
 0x441   : > { %p5343_p10 = scmp.lt.u32.totalorder %s5341_s9, %s5337_s6  ;;  %p5345_p12 = scmp.lt.u32.totalorder %s5337_s6, %s6373_s28 }
 0x442   : > { %p5339_p7 = pnand %p5338_p4, %p5452_p5 }
 0x443   : > { %p5344_p11 = por %p5343_p10, %p5342_p9 }
 0x444   : > { %p5340_p8 = pneg %p5339_p7 }
 0x445   : > { %p5346_p13 = por %p5345_p12, %p5344_p11 }
 0x447   : > { %p5347_p0 = pnand %p5346_p13, %p5340_p8 }
 0x449   : > { %5350 = shalt.err (!%p5347_p0)
}
 0x44a   : > { %s5392_s17 = smov 96   ;;  %s5393_s19 = smov 6  }
 0x44b   : > { %5095 = dma.vmem_to_hbm [thread:$0]  (%p5452_p5), %s6375_s25, 3264, %s6373_s28, %s6383_s16, %s5392_s17, %s5392_s17, %s5393_s19  }
 0x44c PF: > { %p5101_p1 = scmp.ge.s32.totalorder %s5385_s15, 2  ;;  %s3793_s20 = sand.u32 1, %s5373_s12  }
 0x44d   : > { %s3794_s24 = scalar_lea.sflag [#allocation3], %s3793_s20 }
 0x44e   : > { %p5098_p2 = pnand %p5101_p1, %p5456_p6 }
 0x450   : > { %5368 = dma.done.wait (!%p5098_p2), %s3794_s24, 3264  }
 0x451   : > { %5370 = vsyncadd (!%p5098_p2), %s3794_s24, 4294964032  ;;  %p13_p3 = scmp.ge.s32.totalorder %s5439_s18, 5   ;;  %s6436_s12 = smov %s5377_s13 }
 0x452   : > { %s6437_s13 = smov %s5381_s14  ;;  %s6438_s14 = smov %s5450_s21 }
 0x453   : > { %s6439_s15 = smov %s5439_s18  ;;  %15 = sbr.rel (!%p13_p3) target bundleno = 3 (0x3), region = 67 }
 0x45a   :  { %3799 = vsyncpa [#allocation3], 1 }
 0x45b   :  { %3801 = vsyncpa [#allocation3 + $0x1], 1 }

</bundles_post_ra>
